<compile_context>
chip_gen: v6e
topology: v6e:2x2x1
jax: 0.10.0
libtpu: 0.0.40
codegen_flags: <defaults>
</compile_context>

<pallas_src>
import functools

import jax
import jax.numpy as jnp
import numpy as np
from jax.experimental import pallas as pl
from jax.experimental.pallas import tpu as pltpu

# ----------------------------- configuration --------------------------------
N = 2            # batch
PLANES = 16      # planes
EXPANSION = 4
C4 = PLANES * EXPANSION          # 64 (= inplanes so the identity residual works)
CIN = C4                         # inplanes
CATC = 32                        # cat_channel
CARD = 16                        # cardinality (groups of conv2) -> group size 1
REDUCTION = 16
HID = C4 // REDUCTION            # SE hidden dim = 4
H = W = 16
EPS = 1e-5


# ------------------------------ Pallas kernel -------------------------------
def secat_kernel(x_ref, cat_ref, w1_ref, w2_ref, w3_ref, bias_ref,
                 wfc1p_ref, wfc1c_ref, wfc2_ref, out_ref, *, h_dim, w_dim):
    nb = x_ref.shape[0]                  # images in this grid block
    planes = w1_ref.shape[0]
    hw = h_dim * w_dim

    # 3x3 boundary masks on the flattened row-major HW lane axis.  Hoisted out
    # of the per-image loop (JAX does not CSE broadcast_in_dim).
    lane = jax.lax.broadcasted_iota(jnp.int32, (planes, hw), 1)
    xi = lane % w_dim
    has_left = xi >= 1                    # neighbour x-1 exists
    has_right = xi <= w_dim - 2           # neighbour x+1 exists
    has_up = lane >= w_dim                # neighbour y-1 exists
    has_down = lane < hw - w_dim          # neighbour y+1 exists

    for b in range(nb):                   # static unroll over images in the block
        x = x_ref[b].astype(jnp.float32)          # (CIN, HW) channel-major
        cat = cat_ref[b].astype(jnp.float32)      # (CATC, 1)

        # conv1 (1x1, BN1 scale folded) + bias + relu: lane-dense (P, HW)
        h1 = jnp.maximum(
            jnp.dot(w1_ref[...], x, preferred_element_type=jnp.float32)
            + bias_ref[0:planes, 0:1], 0.0)

        # conv2: 3x3 stride-1 pad-1 depthwise conv (cardinality == planes so
        # group size is 1), BN2 scale folded into the per-tap weights.
        # Spatial taps via XLU lane rolls of the flattened HW axis + boundary
        # masks; the FMAs run on the VPU, no scratch, no relayout copies.
        # TODO(synk): general cardinality (group size > 1) would need per-group
        # matmuls; this configuration (planes == cardinality) is exactly depthwise.
        s_l = jnp.where(has_left, pltpu.roll(h1, 1, axis=1), 0.0)        # h1[y, x-1]
        s_r = jnp.where(has_right, pltpu.roll(h1, hw - 1, axis=1), 0.0)  # h1[y, x+1]
        rows = [s_l * w2_ref[dy, 0] + h1 * w2_ref[dy, 1] + s_r * w2_ref[dy, 2]
                for dy in range(3)]                                      # (P, HW) each
        acc = rows[1]
        acc = acc + jnp.where(has_up, pltpu.roll(rows[0], w_dim, axis=1), 0.0)
        acc = acc + jnp.where(has_down, pltpu.roll(rows[2], hw - w_dim, axis=1), 0.0)
        h2 = jnp.maximum(acc + bias_ref[0:planes, 1:2], 0.0)             # (P, HW)

        # conv3 (1x1, BN3 scale folded) + bias
        b3 = bias_ref[:, 2:3]                                            # (C4, 1)
        h3 = jnp.dot(w3_ref[...], h2, preferred_element_type=jnp.float32) + b3  # (C4, HW)

        # SE-cat gate.  Pooled vector computed from h2 (mean(h3) == w3 @ mean(h2) + b3)
        # so the fc/sigmoid chain does not wait on the conv3 matmul.
        pooled = jnp.dot(w3_ref[...], jnp.mean(h2, axis=1, keepdims=True),
                         preferred_element_type=jnp.float32) + b3        # (C4, 1)
        z = jnp.maximum(
            jnp.dot(wfc1p_ref[...], pooled, preferred_element_type=jnp.float32)
            + jnp.dot(wfc1c_ref[...], cat, preferred_element_type=jnp.float32),
            0.0)                                                         # (HID, 1)
        gate = jax.nn.sigmoid(
            jnp.dot(wfc2_ref[...], z, preferred_element_type=jnp.float32))  # (C4, 1)

        # SE scale, identity residual (stride=1, downsample=None, CIN == C4), relu.
        # TODO(synk): a non-None downsample path is not implemented (not used here).
        out_ref[b] = jnp.maximum(h3 * gate + x, 0.0).astype(out_ref.dtype)


# ------------------------------ wrapper --------------------------------------
def _batch_block(n):
    """Images per grid step: split 2-way on v7x (2 TensorCores), else fuse."""
    try:
        kind = jax.devices()[0].device_kind.lower()
    except Exception:
        kind = ""
    if ("v7" in kind or "7x" in kind) and n % 2 == 0:
        return n // 2          # one fat block per TensorCore
    return n                   # single grid step on single-TC chips (v5e/v6e)


@jax.jit
def secat_bottleneckx_pallas(x_nchw, cat_feature, w1s, w2s, w3s, bias,
                             wfc1p, wfc1c, wfc2):
    n, cin, h, w = x_nchw.shape
    planes = w1s.shape[0]
    c4 = w3s.shape[0]
    catc = cat_feature.shape[1]
    hw = h * w

    x_cm = x_nchw.reshape(n, cin, hw)          # contiguous channel-major view of NCHW
    cat_col = cat_feature.reshape(n, catc, 1)

    nb = _batch_block(n)
    kernel = functools.partial(secat_kernel, h_dim=h, w_dim=w)

    grid_spec = pltpu.PrefetchScalarGridSpec(
        num_scalar_prefetch=0,
        grid=(n // nb,),
        in_specs=[
            pl.BlockSpec((nb, cin, hw), lambda i: (i, 0, 0)),       # x (channel-major)
            pl.BlockSpec((nb, catc, 1), lambda i: (i, 0, 0)),       # cat_feature column
            pl.BlockSpec((planes, cin), lambda i: (0, 0)),          # w1 (BN1 folded)
            pl.BlockSpec((3, 3, planes, 1), lambda i: (0, 0, 0, 0)),  # w2 depthwise taps
            pl.BlockSpec((c4, planes), lambda i: (0, 0)),           # w3 (BN3 folded)
            pl.BlockSpec((c4, 3), lambda i: (0, 0)),                # packed biases
            pl.BlockSpec(wfc1p.shape, lambda i: (0, 0)),            # SE fc1 (pooled part)
            pl.BlockSpec(wfc1c.shape, lambda i: (0, 0)),            # SE fc1 (cat part)
            pl.BlockSpec(wfc2.shape, lambda i: (0, 0)),             # SE fc2
        ],
        out_specs=pl.BlockSpec((nb, c4, hw), lambda i: (i, 0, 0)),
    )
    out_cm = pl.pallas_call(
        kernel,
        out_shape=jax.ShapeDtypeStruct((n, c4, hw), jnp.float32),
        grid_spec=grid_spec,
        compiler_params=pltpu.CompilerParams(
            dimension_semantics=("parallel",)),     # 2 TCs on v7x take one block each
    )(x_cm, cat_col, w1s, w2s, w3s, bias, wfc1p, wfc1c, wfc2)
    return out_cm.reshape(n, c4, h, w)


# ------------------------ pure-JAX (PyTorch-equivalent) reference ------------
def torch_style_reference(x_nchw, cat_feature, p):
    def conv(x, wt, padding=0, groups=1):
        return jax.lax.conv_general_dilated(
            x, wt, (1, 1), [(padding, padding)] * 2,
            feature_group_count=groups,
            dimension_numbers=('NCHW', 'OIHW', 'NCHW'))

    def bn(x, gamma, beta, mean, var):
        s = gamma / jnp.sqrt(var + EPS)
        return x * s.reshape(1, -1, 1, 1) + (beta - mean * s).reshape(1, -1, 1, 1)

    out = jax.nn.relu(bn(conv(x_nchw, p['w1']), *p['bn1']))
    out = jax.nn.relu(bn(conv(out, p['w2'], padding=1, groups=CARD), *p['bn2']))
    out = bn(conv(out, p['w3']), *p['bn3'])
    b, c = out.shape[0], out.shape[1]
    y = out.mean(axis=(2, 3))                              # (b, C4)
    y = jnp.concatenate([y, cat_feature], axis=1)
    y = jax.nn.relu(y @ p['fc1'].T)
    y = jax.nn.sigmoid(y @ p['fc2'].T)
    out = out * y.reshape(b, c, 1, 1)
    out = out + x_nchw                                     # downsample is None
    return jax.nn.relu(out)


# ------------------------------- main -----------------------------------------
if __name__ == "__main__":
    key = jax.random.PRNGKey(0)
    ks = jax.random.split(key, 16)

    x_nchw = jax.random.normal(ks[0], (N, CIN, H, W), jnp.float32)
    cat_feature = jax.random.normal(ks[1], (N, CATC), jnp.float32)

    # PyTorch-shaped parameters (deterministic synthetic init).
    w1_t = jax.random.normal(ks[2], (PLANES, CIN, 1, 1), jnp.float32) * 0.1
    w2_t = jax.random.normal(ks[3], (PLANES, PLANES // CARD, 3, 3), jnp.float32) * 0.1
    w3_t = jax.random.normal(ks[4], (C4, PLANES, 1, 1), jnp.float32) * 0.1
    fc1_t = jax.random.normal(ks[5], (HID, C4 + CATC), jnp.float32) * 0.1
    fc2_t = jax.random.normal(ks[6], (C4, HID), jnp.float32) * 0.1

    def make_bn(k, c):
        k1, k2, k3, k4 = jax.random.split(k, 4)
        gamma = 1.0 + 0.1 * jax.random.normal(k1, (c,), jnp.float32)
        beta = 0.1 * jax.random.normal(k2, (c,), jnp.float32)
        mean = 0.1 * jax.random.normal(k3, (c,), jnp.float32)
        var = jnp.abs(jax.random.normal(k4, (c,), jnp.float32)) + 0.5
        return gamma, beta, mean, var

    bn1 = make_bn(ks[7], PLANES)
    bn2 = make_bn(ks[8], PLANES)
    bn3 = make_bn(ks[9], C4)

    # --- fold eval-mode BN into per-channel scale/bias, bake scale into conv weights ---
    def fold_bn(gamma, beta, mean, var):
        s = gamma / jnp.sqrt(var + EPS)
        return s, beta - mean * s

    s1, b1 = fold_bn(*bn1)
    s2, b2 = fold_bn(*bn2)
    s3, b3 = fold_bn(*bn3)

    # conv2 is depthwise in this configuration (group size = planes // cardinality = 1),
    # and the identity residual relies on stride=1, downsample=None, CIN == C4.
    assert PLANES // CARD == 1 and PLANES % CARD == 0
    assert CIN == C4

    # Channel-major packed weights.
    w1s = w1_t[:, :, 0, 0] * s1[:, None]                                     # (P, CIN)
    w3s = w3_t[:, :, 0, 0] * s3[:, None]                                     # (C4, P)
    w2s = (jnp.transpose(w2_t[:, 0], (1, 2, 0)) * s2[None, None, :])[..., None]  # (3,3,P,1)

    # Pack the three BN biases as columns of one small (C4, 3) array.
    bias = jnp.zeros((C4, 3), jnp.float32)
    bias = bias.at[:PLANES, 0].set(b1)
    bias = bias.at[:PLANES, 1].set(b2)
    bias = bias.at[:, 2].set(b3)

    # SE fc weights in column-vector (channel-major) form: z = Wfc1 @ [pooled; cat].
    wfc1p = fc1_t[:, :C4]        # (HID, C4)
    wfc1c = fc1_t[:, C4:]        # (HID, CATC)
    wfc2 = fc2_t                 # (C4, HID)

    # --- run the Pallas kernel (NCHW / channel-major, no transposes needed) ---
    out_nchw = secat_bottleneckx_pallas(
        x_nchw, cat_feature, w1s, w2s, w3s, bias, wfc1p, wfc1c, wfc2)
    out_nchw = jax.block_until_ready(out_nchw)

    # --- reference check against a PyTorch-equivalent lax.conv formulation ---
    params = {'w1': w1_t, 'w2': w2_t, 'w3': w3_t,
              'bn1': bn1, 'bn2': bn2, 'bn3': bn3,
              'fc1': fc1_t, 'fc2': fc2_t}
    ref = jax.block_until_ready(torch_style_reference(x_nchw, cat_feature, params))

    np.testing.assert_allclose(np.asarray(out_nchw), np.asarray(ref),
                               rtol=2e-4, atol=2e-4)
    print("KERNEL_OK")
</pallas_src>

<mosaic_0001>
module attributes {stable_mosaic.version = 11 : i64} {
  func.func @secat_kernel(%arg0: i32, %arg1: memref<2x64x256xf32, #tpu.memory_space<vmem>>, %arg2: memref<2x32x1xf32, #tpu.memory_space<vmem>>, %arg3: memref<16x64xf32, #tpu.memory_space<vmem>>, %arg4: memref<3x3x16x1xf32, #tpu.memory_space<vmem>>, %arg5: memref<64x16xf32, #tpu.memory_space<vmem>>, %arg6: memref<64x3xf32, #tpu.memory_space<vmem>>, %arg7: memref<4x64xf32, #tpu.memory_space<vmem>>, %arg8: memref<4x32xf32, #tpu.memory_space<vmem>>, %arg9: memref<64x4xf32, #tpu.memory_space<vmem>>, %arg10: memref<2x64x256xf32, #tpu.memory_space<vmem>>) attributes {dimension_semantics = [#tpu.dimension_semantics<parallel>], iteration_bounds = array<i64: 1>, scalar_prefetch = 0 : i64, scratch_operands = 0 : i64, tpu.core_type = #tpu.core_type<tc>, window_params = [{transform_indices = @transform_0, window_bounds = array<i64: 2, 64, 256>}, {transform_indices = @transform_1, window_bounds = array<i64: 2, 32, 1>}, {pipeline_mode = #tpu.pipeline_mode<synchronous>, transform_indices = @transform_2, window_bounds = array<i64: 16, 64>}, {pipeline_mode = #tpu.pipeline_mode<synchronous>, transform_indices = @transform_3, window_bounds = array<i64: 3, 3, 16, 1>}, {pipeline_mode = #tpu.pipeline_mode<synchronous>, transform_indices = @transform_4, window_bounds = array<i64: 64, 16>}, {pipeline_mode = #tpu.pipeline_mode<synchronous>, transform_indices = @transform_5, window_bounds = array<i64: 64, 3>}, {pipeline_mode = #tpu.pipeline_mode<synchronous>, transform_indices = @transform_6, window_bounds = array<i64: 4, 64>}, {pipeline_mode = #tpu.pipeline_mode<synchronous>, transform_indices = @transform_7, window_bounds = array<i64: 4, 32>}, {pipeline_mode = #tpu.pipeline_mode<synchronous>, transform_indices = @transform_8, window_bounds = array<i64: 64, 4>}, {transform_indices = @transform_9, window_bounds = array<i64: 2, 64, 256>}]} {
    %0 = tpu.iota {dimensions = array<i32: 1>} : vector<16x256xi32>
    %c16_i32 = arith.constant 16 : i32
    %c0_i32 = arith.constant 0 : i32
    %1 = arith.cmpi eq, %c16_i32, %c0_i32 : i32
    %c1_i32 = arith.constant 1 : i32
    %2 = arith.select %1, %c1_i32, %c16_i32 : i32
    %3 = vector.broadcast %2 : i32 to vector<16x256xi32>
    %4 = arith.remsi %0, %3 : vector<16x256xi32>
    %c0_i32_0 = arith.constant 0 : i32
    %5 = vector.broadcast %c0_i32_0 : i32 to vector<16x256xi32>
    %6 = arith.cmpi ne, %4, %5 : vector<16x256xi32>
    %c0_i32_1 = arith.constant 0 : i32
    %7 = vector.broadcast %c0_i32_1 : i32 to vector<16x256xi32>
    %8 = arith.cmpi slt, %4, %7 : vector<16x256xi32>
    %c0_i32_2 = arith.constant 0 : i32
    %9 = arith.cmpi slt, %2, %c0_i32_2 : i32
    %10 = vector.broadcast %9 : i1 to vector<16x256xi1>
    %11 = vector.broadcast %10 : vector<16x256xi1> to vector<16x256xi1>
    %12 = arith.xori %8, %11 : vector<16x256xi1>
    %13 = arith.andi %12, %6 : vector<16x256xi1>
    %14 = vector.broadcast %2 : i32 to vector<16x256xi32>
    %15 = arith.addi %4, %14 : vector<16x256xi32>
    %16 = arith.select %13, %15, %4 : vector<16x256xi1>, vector<16x256xi32>
    %c1_i32_3 = arith.constant 1 : i32
    %17 = vector.broadcast %c1_i32_3 : i32 to vector<16x256xi32>
    %18 = arith.cmpi sge, %16, %17 : vector<16x256xi32>
    %c14_i32 = arith.constant 14 : i32
    %19 = vector.broadcast %c14_i32 : i32 to vector<16x256xi32>
    %20 = arith.cmpi sle, %16, %19 : vector<16x256xi32>
    %c16_i32_4 = arith.constant 16 : i32
    %21 = vector.broadcast %c16_i32_4 : i32 to vector<16x256xi32>
    %22 = arith.cmpi sge, %0, %21 : vector<16x256xi32>
    %c240_i32 = arith.constant 240 : i32
    %23 = vector.broadcast %c240_i32 : i32 to vector<16x256xi32>
    %24 = arith.cmpi slt, %0, %23 : vector<16x256xi32>
    %c0 = arith.constant 0 : index
    %c0_5 = arith.constant 0 : index
    %c0_6 = arith.constant 0 : index
    %25 = vector.load %arg1[%c0, %c0_5, %c0_6] : memref<2x64x256xf32, #tpu.memory_space<vmem>>, vector<1x64x256xf32>
    %26 = vector.shape_cast %25 : vector<1x64x256xf32> to vector<64x256xf32>
    %c0_7 = arith.constant 0 : index
    %c0_8 = arith.constant 0 : index
    %c0_9 = arith.constant 0 : index
    %27 = vector.load %arg2[%c0_7, %c0_8, %c0_9] : memref<2x32x1xf32, #tpu.memory_space<vmem>>, vector<1x32x1xf32>
    %28 = vector.shape_cast %27 : vector<1x32x1xf32> to vector<32x1xf32>
    %c0_10 = arith.constant 0 : index
    %c0_11 = arith.constant 0 : index
    %29 = vector.load %arg3[%c0_10, %c0_11] : memref<16x64xf32, #tpu.memory_space<vmem>>, vector<16x64xf32>
    %cst = arith.constant dense<0.000000e+00> : vector<16x256xf32>
    %30 = tpu.matmul %29, %26, %cst {dimension_numbers = #tpu.dot_dimension_numbers<[1], [0], [0], [1], [0, 0, 1, 1], [], []>} : vector<16x64xf32>, vector<64x256xf32>, vector<16x256xf32> -> vector<16x256xf32>
    %c0_12 = arith.constant 0 : index
    %c0_13 = arith.constant 0 : index
    %31 = vector.load %arg6[%c0_12, %c0_13] : memref<64x3xf32, #tpu.memory_space<vmem>>, vector<16x1xf32>
    %32 = vector.broadcast %31 : vector<16x1xf32> to vector<16x256xf32>
    %33 = arith.addf %30, %32 : vector<16x256xf32>
    %cst_14 = arith.constant 0.000000e+00 : f32
    %34 = vector.broadcast %cst_14 : f32 to vector<16x256xf32>
    %35 = arith.maximumf %33, %34 : vector<16x256xf32>
    %c1_i32_15 = arith.constant 1 : i32
    %36 = tpu.dynamic_rotate %35 by %c1_i32_15 dim 1 : vector<16x256xf32>, i32 -> vector<16x256xf32>
    %cst_16 = arith.constant 0.000000e+00 : f32
    %37 = vector.broadcast %cst_16 : f32 to vector<16x256xf32>
    %38 = arith.select %18, %36, %37 : vector<16x256xi1>, vector<16x256xf32>
    %c255_i32 = arith.constant 255 : i32
    %39 = tpu.dynamic_rotate %35 by %c255_i32 dim 1 : vector<16x256xf32>, i32 -> vector<16x256xf32>
    %cst_17 = arith.constant 0.000000e+00 : f32
    %40 = vector.broadcast %cst_17 : f32 to vector<16x256xf32>
    %41 = arith.select %20, %39, %40 : vector<16x256xi1>, vector<16x256xf32>
    %c0_18 = arith.constant 0 : index
    %c0_19 = arith.constant 0 : index
    %c0_20 = arith.constant 0 : index
    %c0_21 = arith.constant 0 : index
    %42 = vector.load %arg4[%c0_18, %c0_19, %c0_20, %c0_21] : memref<3x3x16x1xf32, #tpu.memory_space<vmem>>, vector<1x1x16x1xf32>
    %43 = vector.shape_cast %42 : vector<1x1x16x1xf32> to vector<16x1xf32>
    %44 = vector.broadcast %43 : vector<16x1xf32> to vector<16x256xf32>
    %45 = arith.mulf %38, %44 : vector<16x256xf32>
    %c0_22 = arith.constant 0 : index
    %c1 = arith.constant 1 : index
    %c0_23 = arith.constant 0 : index
    %c0_24 = arith.constant 0 : index
    %46 = vector.load %arg4[%c0_22, %c1, %c0_23, %c0_24] : memref<3x3x16x1xf32, #tpu.memory_space<vmem>>, vector<1x1x16x1xf32>
    %47 = vector.shape_cast %46 : vector<1x1x16x1xf32> to vector<16x1xf32>
    %48 = vector.broadcast %47 : vector<16x1xf32> to vector<16x256xf32>
    %49 = arith.mulf %35, %48 : vector<16x256xf32>
    %50 = arith.addf %45, %49 : vector<16x256xf32>
    %c0_25 = arith.constant 0 : index
    %c2 = arith.constant 2 : index
    %c0_26 = arith.constant 0 : index
    %c0_27 = arith.constant 0 : index
    %51 = vector.load %arg4[%c0_25, %c2, %c0_26, %c0_27] : memref<3x3x16x1xf32, #tpu.memory_space<vmem>>, vector<1x1x16x1xf32>
    %52 = vector.shape_cast %51 : vector<1x1x16x1xf32> to vector<16x1xf32>
    %53 = vector.broadcast %52 : vector<16x1xf32> to vector<16x256xf32>
    %54 = arith.mulf %41, %53 : vector<16x256xf32>
    %55 = arith.addf %50, %54 : vector<16x256xf32>
    %c1_28 = arith.constant 1 : index
    %c0_29 = arith.constant 0 : index
    %c0_30 = arith.constant 0 : index
    %c0_31 = arith.constant 0 : index
    %56 = vector.load %arg4[%c1_28, %c0_29, %c0_30, %c0_31] : memref<3x3x16x1xf32, #tpu.memory_space<vmem>>, vector<1x1x16x1xf32>
    %57 = vector.shape_cast %56 : vector<1x1x16x1xf32> to vector<16x1xf32>
    %58 = vector.broadcast %57 : vector<16x1xf32> to vector<16x256xf32>
    %59 = arith.mulf %38, %58 : vector<16x256xf32>
    %c1_32 = arith.constant 1 : index
    %c1_33 = arith.constant 1 : index
    %c0_34 = arith.constant 0 : index
    %c0_35 = arith.constant 0 : index
    %60 = vector.load %arg4[%c1_32, %c1_33, %c0_34, %c0_35] : memref<3x3x16x1xf32, #tpu.memory_space<vmem>>, vector<1x1x16x1xf32>
    %61 = vector.shape_cast %60 : vector<1x1x16x1xf32> to vector<16x1xf32>
    %62 = vector.broadcast %61 : vector<16x1xf32> to vector<16x256xf32>
    %63 = arith.mulf %35, %62 : vector<16x256xf32>
    %64 = arith.addf %59, %63 : vector<16x256xf32>
    %c1_36 = arith.constant 1 : index
    %c2_37 = arith.constant 2 : index
    %c0_38 = arith.constant 0 : index
    %c0_39 = arith.constant 0 : index
    %65 = vector.load %arg4[%c1_36, %c2_37, %c0_38, %c0_39] : memref<3x3x16x1xf32, #tpu.memory_space<vmem>>, vector<1x1x16x1xf32>
    %66 = vector.shape_cast %65 : vector<1x1x16x1xf32> to vector<16x1xf32>
    %67 = vector.broadcast %66 : vector<16x1xf32> to vector<16x256xf32>
    %68 = arith.mulf %41, %67 : vector<16x256xf32>
    %69 = arith.addf %64, %68 : vector<16x256xf32>
    %c2_40 = arith.constant 2 : index
    %c0_41 = arith.constant 0 : index
    %c0_42 = arith.constant 0 : index
    %c0_43 = arith.constant 0 : index
    %70 = vector.load %arg4[%c2_40, %c0_41, %c0_42, %c0_43] : memref<3x3x16x1xf32, #tpu.memory_space<vmem>>, vector<1x1x16x1xf32>
    %71 = vector.shape_cast %70 : vector<1x1x16x1xf32> to vector<16x1xf32>
    %72 = vector.broadcast %71 : vector<16x1xf32> to vector<16x256xf32>
    %73 = arith.mulf %38, %72 : vector<16x256xf32>
    %c2_44 = arith.constant 2 : index
    %c1_45 = arith.constant 1 : index
    %c0_46 = arith.constant 0 : index
    %c0_47 = arith.constant 0 : index
    %74 = vector.load %arg4[%c2_44, %c1_45, %c0_46, %c0_47] : memref<3x3x16x1xf32, #tpu.memory_space<vmem>>, vector<1x1x16x1xf32>
    %75 = vector.shape_cast %74 : vector<1x1x16x1xf32> to vector<16x1xf32>
    %76 = vector.broadcast %75 : vector<16x1xf32> to vector<16x256xf32>
    %77 = arith.mulf %35, %76 : vector<16x256xf32>
    %78 = arith.addf %73, %77 : vector<16x256xf32>
    %c2_48 = arith.constant 2 : index
    %c2_49 = arith.constant 2 : index
    %c0_50 = arith.constant 0 : index
    %c0_51 = arith.constant 0 : index
    %79 = vector.load %arg4[%c2_48, %c2_49, %c0_50, %c0_51] : memref<3x3x16x1xf32, #tpu.memory_space<vmem>>, vector<1x1x16x1xf32>
    %80 = vector.shape_cast %79 : vector<1x1x16x1xf32> to vector<16x1xf32>
    %81 = vector.broadcast %80 : vector<16x1xf32> to vector<16x256xf32>
    %82 = arith.mulf %41, %81 : vector<16x256xf32>
    %83 = arith.addf %78, %82 : vector<16x256xf32>
    %c16_i32_52 = arith.constant 16 : i32
    %84 = tpu.dynamic_rotate %55 by %c16_i32_52 dim 1 : vector<16x256xf32>, i32 -> vector<16x256xf32>
    %cst_53 = arith.constant 0.000000e+00 : f32
    %85 = vector.broadcast %cst_53 : f32 to vector<16x256xf32>
    %86 = arith.select %22, %84, %85 : vector<16x256xi1>, vector<16x256xf32>
    %87 = arith.addf %69, %86 : vector<16x256xf32>
    %c240_i32_54 = arith.constant 240 : i32
    %88 = tpu.dynamic_rotate %83 by %c240_i32_54 dim 1 : vector<16x256xf32>, i32 -> vector<16x256xf32>
    %cst_55 = arith.constant 0.000000e+00 : f32
    %89 = vector.broadcast %cst_55 : f32 to vector<16x256xf32>
    %90 = arith.select %24, %88, %89 : vector<16x256xi1>, vector<16x256xf32>
    %91 = arith.addf %87, %90 : vector<16x256xf32>
    %c0_56 = arith.constant 0 : index
    %c1_57 = arith.constant 1 : index
    %92 = vector.load %arg6[%c0_56, %c1_57] : memref<64x3xf32, #tpu.memory_space<vmem>>, vector<16x1xf32>
    %93 = vector.broadcast %92 : vector<16x1xf32> to vector<16x256xf32>
    %94 = arith.addf %91, %93 : vector<16x256xf32>
    %cst_58 = arith.constant 0.000000e+00 : f32
    %95 = vector.broadcast %cst_58 : f32 to vector<16x256xf32>
    %96 = arith.maximumf %94, %95 : vector<16x256xf32>
    %c0_59 = arith.constant 0 : index
    %c2_60 = arith.constant 2 : index
    %97 = vector.load %arg6[%c0_59, %c2_60] : memref<64x3xf32, #tpu.memory_space<vmem>>, vector<64x1xf32>
    %c0_61 = arith.constant 0 : index
    %c0_62 = arith.constant 0 : index
    %98 = vector.load %arg5[%c0_61, %c0_62] : memref<64x16xf32, #tpu.memory_space<vmem>>, vector<64x16xf32>
    %cst_63 = arith.constant dense<0.000000e+00> : vector<64x256xf32>
    %99 = tpu.matmul %98, %96, %cst_63 {dimension_numbers = #tpu.dot_dimension_numbers<[1], [0], [0], [1], [0, 0, 1, 1], [], []>} : vector<64x16xf32>, vector<16x256xf32>, vector<64x256xf32> -> vector<64x256xf32>
    %100 = vector.broadcast %97 : vector<64x1xf32> to vector<64x256xf32>
    %101 = arith.addf %99, %100 : vector<64x256xf32>
    %c0_64 = arith.constant 0 : index
    %c0_65 = arith.constant 0 : index
    %102 = vector.load %arg5[%c0_64, %c0_65] : memref<64x16xf32, #tpu.memory_space<vmem>>, vector<64x16xf32>
    %cst_66 = arith.constant dense<0.000000e+00> : vector<16xf32>
    %103 = vector.multi_reduction <add>, %96, %cst_66 [1] : vector<16x256xf32> to vector<16xf32>
    %104 = vector.shape_cast %103 : vector<16xf32> to vector<16x1xf32>
    %cst_67 = arith.constant 2.560000e+02 : f32
    %105 = vector.broadcast %cst_67 : f32 to vector<16x1xf32>
    %106 = arith.divf %104, %105 : vector<16x1xf32>
    %cst_68 = arith.constant dense<0.000000e+00> : vector<64x1xf32>
    %107 = tpu.matmul %102, %106, %cst_68 {dimension_numbers = #tpu.dot_dimension_numbers<[1], [0], [0], [1], [0, 0, 1, 1], [], []>} : vector<64x16xf32>, vector<16x1xf32>, vector<64x1xf32> -> vector<64x1xf32>
    %108 = arith.addf %107, %97 : vector<64x1xf32>
    %c0_69 = arith.constant 0 : index
    %c0_70 = arith.constant 0 : index
    %109 = vector.load %arg7[%c0_69, %c0_70] : memref<4x64xf32, #tpu.memory_space<vmem>>, vector<4x64xf32>
    %cst_71 = arith.constant dense<0.000000e+00> : vector<4x1xf32>
    %110 = tpu.matmul %109, %108, %cst_71 {dimension_numbers = #tpu.dot_dimension_numbers<[1], [0], [0], [1], [0, 0, 1, 1], [], []>} : vector<4x64xf32>, vector<64x1xf32>, vector<4x1xf32> -> vector<4x1xf32>
    %c0_72 = arith.constant 0 : index
    %c0_73 = arith.constant 0 : index
    %111 = vector.load %arg8[%c0_72, %c0_73] : memref<4x32xf32, #tpu.memory_space<vmem>>, vector<4x32xf32>
    %cst_74 = arith.constant dense<0.000000e+00> : vector<4x1xf32>
    %112 = tpu.matmul %111, %28, %cst_74 {dimension_numbers = #tpu.dot_dimension_numbers<[1], [0], [0], [1], [0, 0, 1, 1], [], []>} : vector<4x32xf32>, vector<32x1xf32>, vector<4x1xf32> -> vector<4x1xf32>
    %113 = arith.addf %110, %112 : vector<4x1xf32>
    %cst_75 = arith.constant 0.000000e+00 : f32
    %114 = vector.broadcast %cst_75 : f32 to vector<4x1xf32>
    %115 = arith.maximumf %113, %114 : vector<4x1xf32>
    %c0_76 = arith.constant 0 : index
    %c0_77 = arith.constant 0 : index
    %116 = vector.load %arg9[%c0_76, %c0_77] : memref<64x4xf32, #tpu.memory_space<vmem>>, vector<64x4xf32>
    %cst_78 = arith.constant dense<0.000000e+00> : vector<64x1xf32>
    %117 = tpu.matmul %116, %115, %cst_78 {dimension_numbers = #tpu.dot_dimension_numbers<[1], [0], [0], [1], [0, 0, 1, 1], [], []>} : vector<64x4xf32>, vector<4x1xf32>, vector<64x1xf32> -> vector<64x1xf32>
    %118 = arith.negf %117 : vector<64x1xf32>
    %119 = math.exp %118 : vector<64x1xf32>
    %cst_79 = arith.constant 1.000000e+00 : f32
    %120 = vector.broadcast %cst_79 : f32 to vector<64x1xf32>
    %121 = arith.addf %120, %119 : vector<64x1xf32>
    %122 = arith.divf %120, %121 : vector<64x1xf32>
    %123 = vector.broadcast %122 : vector<64x1xf32> to vector<64x256xf32>
    %124 = arith.mulf %101, %123 : vector<64x256xf32>
    %125 = arith.addf %124, %26 : vector<64x256xf32>
    %cst_80 = arith.constant 0.000000e+00 : f32
    %126 = vector.broadcast %cst_80 : f32 to vector<64x256xf32>
    %127 = arith.maximumf %125, %126 : vector<64x256xf32>
    %c0_81 = arith.constant 0 : index
    %c0_82 = arith.constant 0 : index
    %c0_83 = arith.constant 0 : index
    %128 = vector.load %arg10[%c0_81, %c0_82, %c0_83] : memref<2x64x256xf32, #tpu.memory_space<vmem>>, vector<1x64x256xf32>
    %129 = vector.shape_cast %128 : vector<1x64x256xf32> to vector<64x256xf32>
    %130 = vector.shape_cast %127 : vector<64x256xf32> to vector<1x64x256xf32>
    tpu.vector_store %arg10[%c0_81, %c0_82, %c0_83], %130 {strides = array<i32>} : memref<2x64x256xf32, #tpu.memory_space<vmem>>, vector<1x64x256xf32>,
    %c1_84 = arith.constant 1 : index
    %c0_85 = arith.constant 0 : index
    %c0_86 = arith.constant 0 : index
    %131 = vector.load %arg1[%c1_84, %c0_85, %c0_86] : memref<2x64x256xf32, #tpu.memory_space<vmem>>, vector<1x64x256xf32>
    %132 = vector.shape_cast %131 : vector<1x64x256xf32> to vector<64x256xf32>
    %c1_87 = arith.constant 1 : index
    %c0_88 = arith.constant 0 : index
    %c0_89 = arith.constant 0 : index
    %133 = vector.load %arg2[%c1_87, %c0_88, %c0_89] : memref<2x32x1xf32, #tpu.memory_space<vmem>>, vector<1x32x1xf32>
    %134 = vector.shape_cast %133 : vector<1x32x1xf32> to vector<32x1xf32>
    %c0_90 = arith.constant 0 : index
    %c0_91 = arith.constant 0 : index
    %135 = vector.load %arg3[%c0_90, %c0_91] : memref<16x64xf32, #tpu.memory_space<vmem>>, vector<16x64xf32>
    %cst_92 = arith.constant dense<0.000000e+00> : vector<16x256xf32>
    %136 = tpu.matmul %135, %132, %cst_92 {dimension_numbers = #tpu.dot_dimension_numbers<[1], [0], [0], [1], [0, 0, 1, 1], [], []>} : vector<16x64xf32>, vector<64x256xf32>, vector<16x256xf32> -> vector<16x256xf32>
    %c0_93 = arith.constant 0 : index
    %c0_94 = arith.constant 0 : index
    %137 = vector.load %arg6[%c0_93, %c0_94] : memref<64x3xf32, #tpu.memory_space<vmem>>, vector<16x1xf32>
    %138 = vector.broadcast %137 : vector<16x1xf32> to vector<16x256xf32>
    %139 = arith.addf %136, %138 : vector<16x256xf32>
    %cst_95 = arith.constant 0.000000e+00 : f32
    %140 = vector.broadcast %cst_95 : f32 to vector<16x256xf32>
    %141 = arith.maximumf %139, %140 : vector<16x256xf32>
    %c1_i32_96 = arith.constant 1 : i32
    %142 = tpu.dynamic_rotate %141 by %c1_i32_96 dim 1 : vector<16x256xf32>, i32 -> vector<16x256xf32>
    %cst_97 = arith.constant 0.000000e+00 : f32
    %143 = vector.broadcast %cst_97 : f32 to vector<16x256xf32>
    %144 = arith.select %18, %142, %143 : vector<16x256xi1>, vector<16x256xf32>
    %c255_i32_98 = arith.constant 255 : i32
    %145 = tpu.dynamic_rotate %141 by %c255_i32_98 dim 1 : vector<16x256xf32>, i32 -> vector<16x256xf32>
    %cst_99 = arith.constant 0.000000e+00 : f32
    %146 = vector.broadcast %cst_99 : f32 to vector<16x256xf32>
    %147 = arith.select %20, %145, %146 : vector<16x256xi1>, vector<16x256xf32>
    %c0_100 = arith.constant 0 : index
    %c0_101 = arith.constant 0 : index
    %c0_102 = arith.constant 0 : index
    %c0_103 = arith.constant 0 : index
    %148 = vector.load %arg4[%c0_100, %c0_101, %c0_102, %c0_103] : memref<3x3x16x1xf32, #tpu.memory_space<vmem>>, vector<1x1x16x1xf32>
    %149 = vector.shape_cast %148 : vector<1x1x16x1xf32> to vector<16x1xf32>
    %150 = vector.broadcast %149 : vector<16x1xf32> to vector<16x256xf32>
    %151 = arith.mulf %144, %150 : vector<16x256xf32>
    %c0_104 = arith.constant 0 : index
    %c1_105 = arith.constant 1 : index
    %c0_106 = arith.constant 0 : index
    %c0_107 = arith.constant 0 : index
    %152 = vector.load %arg4[%c0_104, %c1_105, %c0_106, %c0_107] : memref<3x3x16x1xf32, #tpu.memory_space<vmem>>, vector<1x1x16x1xf32>
    %153 = vector.shape_cast %152 : vector<1x1x16x1xf32> to vector<16x1xf32>
    %154 = vector.broadcast %153 : vector<16x1xf32> to vector<16x256xf32>
    %155 = arith.mulf %141, %154 : vector<16x256xf32>
    %156 = arith.addf %151, %155 : vector<16x256xf32>
    %c0_108 = arith.constant 0 : index
    %c2_109 = arith.constant 2 : index
    %c0_110 = arith.constant 0 : index
    %c0_111 = arith.constant 0 : index
    %157 = vector.load %arg4[%c0_108, %c2_109, %c0_110, %c0_111] : memref<3x3x16x1xf32, #tpu.memory_space<vmem>>, vector<1x1x16x1xf32>
    %158 = vector.shape_cast %157 : vector<1x1x16x1xf32> to vector<16x1xf32>
    %159 = vector.broadcast %158 : vector<16x1xf32> to vector<16x256xf32>
    %160 = arith.mulf %147, %159 : vector<16x256xf32>
    %161 = arith.addf %156, %160 : vector<16x256xf32>
    %c1_112 = arith.constant 1 : index
    %c0_113 = arith.constant 0 : index
    %c0_114 = arith.constant 0 : index
    %c0_115 = arith.constant 0 : index
    %162 = vector.load %arg4[%c1_112, %c0_113, %c0_114, %c0_115] : memref<3x3x16x1xf32, #tpu.memory_space<vmem>>, vector<1x1x16x1xf32>
    %163 = vector.shape_cast %162 : vector<1x1x16x1xf32> to vector<16x1xf32>
    %164 = vector.broadcast %163 : vector<16x1xf32> to vector<16x256xf32>
    %165 = arith.mulf %144, %164 : vector<16x256xf32>
    %c1_116 = arith.constant 1 : index
    %c1_117 = arith.constant 1 : index
    %c0_118 = arith.constant 0 : index
    %c0_119 = arith.constant 0 : index
    %166 = vector.load %arg4[%c1_116, %c1_117, %c0_118, %c0_119] : memref<3x3x16x1xf32, #tpu.memory_space<vmem>>, vector<1x1x16x1xf32>
    %167 = vector.shape_cast %166 : vector<1x1x16x1xf32> to vector<16x1xf32>
    %168 = vector.broadcast %167 : vector<16x1xf32> to vector<16x256xf32>
    %169 = arith.mulf %141, %168 : vector<16x256xf32>
    %170 = arith.addf %165, %169 : vector<16x256xf32>
    %c1_120 = arith.constant 1 : index
    %c2_121 = arith.constant 2 : index
    %c0_122 = arith.constant 0 : index
    %c0_123 = arith.constant 0 : index
    %171 = vector.load %arg4[%c1_120, %c2_121, %c0_122, %c0_123] : memref<3x3x16x1xf32, #tpu.memory_space<vmem>>, vector<1x1x16x1xf32>
    %172 = vector.shape_cast %171 : vector<1x1x16x1xf32> to vector<16x1xf32>
    %173 = vector.broadcast %172 : vector<16x1xf32> to vector<16x256xf32>
    %174 = arith.mulf %147, %173 : vector<16x256xf32>
    %175 = arith.addf %170, %174 : vector<16x256xf32>
    %c2_124 = arith.constant 2 : index
    %c0_125 = arith.constant 0 : index
    %c0_126 = arith.constant 0 : index
    %c0_127 = arith.constant 0 : index
    %176 = vector.load %arg4[%c2_124, %c0_125, %c0_126, %c0_127] : memref<3x3x16x1xf32, #tpu.memory_space<vmem>>, vector<1x1x16x1xf32>
    %177 = vector.shape_cast %176 : vector<1x1x16x1xf32> to vector<16x1xf32>
    %178 = vector.broadcast %177 : vector<16x1xf32> to vector<16x256xf32>
    %179 = arith.mulf %144, %178 : vector<16x256xf32>
    %c2_128 = arith.constant 2 : index
    %c1_129 = arith.constant 1 : index
    %c0_130 = arith.constant 0 : index
    %c0_131 = arith.constant 0 : index
    %180 = vector.load %arg4[%c2_128, %c1_129, %c0_130, %c0_131] : memref<3x3x16x1xf32, #tpu.memory_space<vmem>>, vector<1x1x16x1xf32>
    %181 = vector.shape_cast %180 : vector<1x1x16x1xf32> to vector<16x1xf32>
    %182 = vector.broadcast %181 : vector<16x1xf32> to vector<16x256xf32>
    %183 = arith.mulf %141, %182 : vector<16x256xf32>
    %184 = arith.addf %179, %183 : vector<16x256xf32>
    %c2_132 = arith.constant 2 : index
    %c2_133 = arith.constant 2 : index
    %c0_134 = arith.constant 0 : index
    %c0_135 = arith.constant 0 : index
    %185 = vector.load %arg4[%c2_132, %c2_133, %c0_134, %c0_135] : memref<3x3x16x1xf32, #tpu.memory_space<vmem>>, vector<1x1x16x1xf32>
    %186 = vector.shape_cast %185 : vector<1x1x16x1xf32> to vector<16x1xf32>
    %187 = vector.broadcast %186 : vector<16x1xf32> to vector<16x256xf32>
    %188 = arith.mulf %147, %187 : vector<16x256xf32>
    %189 = arith.addf %184, %188 : vector<16x256xf32>
    %c16_i32_136 = arith.constant 16 : i32
    %190 = tpu.dynamic_rotate %161 by %c16_i32_136 dim 1 : vector<16x256xf32>, i32 -> vector<16x256xf32>
    %cst_137 = arith.constant 0.000000e+00 : f32
    %191 = vector.broadcast %cst_137 : f32 to vector<16x256xf32>
    %192 = arith.select %22, %190, %191 : vector<16x256xi1>, vector<16x256xf32>
    %193 = arith.addf %175, %192 : vector<16x256xf32>
    %c240_i32_138 = arith.constant 240 : i32
    %194 = tpu.dynamic_rotate %189 by %c240_i32_138 dim 1 : vector<16x256xf32>, i32 -> vector<16x256xf32>
    %cst_139 = arith.constant 0.000000e+00 : f32
    %195 = vector.broadcast %cst_139 : f32 to vector<16x256xf32>
    %196 = arith.select %24, %194, %195 : vector<16x256xi1>, vector<16x256xf32>
    %197 = arith.addf %193, %196 : vector<16x256xf32>
    %c0_140 = arith.constant 0 : index
    %c1_141 = arith.constant 1 : index
    %198 = vector.load %arg6[%c0_140, %c1_141] : memref<64x3xf32, #tpu.memory_space<vmem>>, vector<16x1xf32>
    %199 = vector.broadcast %198 : vector<16x1xf32> to vector<16x256xf32>
    %200 = arith.addf %197, %199 : vector<16x256xf32>
    %cst_142 = arith.constant 0.000000e+00 : f32
    %201 = vector.broadcast %cst_142 : f32 to vector<16x256xf32>
    %202 = arith.maximumf %200, %201 : vector<16x256xf32>
    %c0_143 = arith.constant 0 : index
    %c2_144 = arith.constant 2 : index
    %203 = vector.load %arg6[%c0_143, %c2_144] : memref<64x3xf32, #tpu.memory_space<vmem>>, vector<64x1xf32>
    %c0_145 = arith.constant 0 : index
    %c0_146 = arith.constant 0 : index
    %204 = vector.load %arg5[%c0_145, %c0_146] : memref<64x16xf32, #tpu.memory_space<vmem>>, vector<64x16xf32>
    %cst_147 = arith.constant dense<0.000000e+00> : vector<64x256xf32>
    %205 = tpu.matmul %204, %202, %cst_147 {dimension_numbers = #tpu.dot_dimension_numbers<[1], [0], [0], [1], [0, 0, 1, 1], [], []>} : vector<64x16xf32>, vector<16x256xf32>, vector<64x256xf32> -> vector<64x256xf32>
    %206 = vector.broadcast %203 : vector<64x1xf32> to vector<64x256xf32>
    %207 = arith.addf %205, %206 : vector<64x256xf32>
    %c0_148 = arith.constant 0 : index
    %c0_149 = arith.constant 0 : index
    %208 = vector.load %arg5[%c0_148, %c0_149] : memref<64x16xf32, #tpu.memory_space<vmem>>, vector<64x16xf32>
    %cst_150 = arith.constant dense<0.000000e+00> : vector<16xf32>
    %209 = vector.multi_reduction <add>, %202, %cst_150 [1] : vector<16x256xf32> to vector<16xf32>
    %210 = vector.shape_cast %209 : vector<16xf32> to vector<16x1xf32>
    %cst_151 = arith.constant 2.560000e+02 : f32
    %211 = vector.broadcast %cst_151 : f32 to vector<16x1xf32>
    %212 = arith.divf %210, %211 : vector<16x1xf32>
    %cst_152 = arith.constant dense<0.000000e+00> : vector<64x1xf32>
    %213 = tpu.matmul %208, %212, %cst_152 {dimension_numbers = #tpu.dot_dimension_numbers<[1], [0], [0], [1], [0, 0, 1, 1], [], []>} : vector<64x16xf32>, vector<16x1xf32>, vector<64x1xf32> -> vector<64x1xf32>
    %214 = arith.addf %213, %203 : vector<64x1xf32>
    %c0_153 = arith.constant 0 : index
    %c0_154 = arith.constant 0 : index
    %215 = vector.load %arg7[%c0_153, %c0_154] : memref<4x64xf32, #tpu.memory_space<vmem>>, vector<4x64xf32>
    %cst_155 = arith.constant dense<0.000000e+00> : vector<4x1xf32>
    %216 = tpu.matmul %215, %214, %cst_155 {dimension_numbers = #tpu.dot_dimension_numbers<[1], [0], [0], [1], [0, 0, 1, 1], [], []>} : vector<4x64xf32>, vector<64x1xf32>, vector<4x1xf32> -> vector<4x1xf32>
    %c0_156 = arith.constant 0 : index
    %c0_157 = arith.constant 0 : index
    %217 = vector.load %arg8[%c0_156, %c0_157] : memref<4x32xf32, #tpu.memory_space<vmem>>, vector<4x32xf32>
    %cst_158 = arith.constant dense<0.000000e+00> : vector<4x1xf32>
    %218 = tpu.matmul %217, %134, %cst_158 {dimension_numbers = #tpu.dot_dimension_numbers<[1], [0], [0], [1], [0, 0, 1, 1], [], []>} : vector<4x32xf32>, vector<32x1xf32>, vector<4x1xf32> -> vector<4x1xf32>
    %219 = arith.addf %216, %218 : vector<4x1xf32>
    %cst_159 = arith.constant 0.000000e+00 : f32
    %220 = vector.broadcast %cst_159 : f32 to vector<4x1xf32>
    %221 = arith.maximumf %219, %220 : vector<4x1xf32>
    %c0_160 = arith.constant 0 : index
    %c0_161 = arith.constant 0 : index
    %222 = vector.load %arg9[%c0_160, %c0_161] : memref<64x4xf32, #tpu.memory_space<vmem>>, vector<64x4xf32>
    %cst_162 = arith.constant dense<0.000000e+00> : vector<64x1xf32>
    %223 = tpu.matmul %222, %221, %cst_162 {dimension_numbers = #tpu.dot_dimension_numbers<[1], [0], [0], [1], [0, 0, 1, 1], [], []>} : vector<64x4xf32>, vector<4x1xf32>, vector<64x1xf32> -> vector<64x1xf32>
    %224 = arith.negf %223 : vector<64x1xf32>
    %225 = math.exp %224 : vector<64x1xf32>
    %cst_163 = arith.constant 1.000000e+00 : f32
    %226 = vector.broadcast %cst_163 : f32 to vector<64x1xf32>
    %227 = arith.addf %226, %225 : vector<64x1xf32>
    %228 = arith.divf %226, %227 : vector<64x1xf32>
    %229 = vector.broadcast %228 : vector<64x1xf32> to vector<64x256xf32>
    %230 = arith.mulf %207, %229 : vector<64x256xf32>
    %231 = arith.addf %230, %132 : vector<64x256xf32>
    %cst_164 = arith.constant 0.000000e+00 : f32
    %232 = vector.broadcast %cst_164 : f32 to vector<64x256xf32>
    %233 = arith.maximumf %231, %232 : vector<64x256xf32>
    %c1_165 = arith.constant 1 : index
    %c0_166 = arith.constant 0 : index
    %c0_167 = arith.constant 0 : index
    %234 = vector.load %arg10[%c1_165, %c0_166, %c0_167] : memref<2x64x256xf32, #tpu.memory_space<vmem>>, vector<1x64x256xf32>
    %235 = vector.shape_cast %234 : vector<1x64x256xf32> to vector<64x256xf32>
    %236 = vector.shape_cast %233 : vector<64x256xf32> to vector<1x64x256xf32>
    tpu.vector_store %arg10[%c1_165, %c0_166, %c0_167], %236 {strides = array<i32>} : memref<2x64x256xf32, #tpu.memory_space<vmem>>, vector<1x64x256xf32>,
    return
  }
  func.func @transform_0(%arg0: i32) -> (i32, i32, i32) {
    %c0_i32 = arith.constant 0 : i32
    %c0_i32_0 = arith.constant 0 : i32
    %c0_i32_1 = arith.constant 0 : i32
    return %arg0, %c0_i32, %c0_i32_0 : i32, i32, i32
  }
  func.func @transform_1(%arg0: i32) -> (i32, i32, i32) {
    %c0_i32 = arith.constant 0 : i32
    %c0_i32_0 = arith.constant 0 : i32
    %c0_i32_1 = arith.constant 0 : i32
    return %arg0, %c0_i32, %c0_i32_0 : i32, i32, i32
  }
  func.func @transform_2(%arg0: i32) -> (i32, i32) {
    %c0_i32 = arith.constant 0 : i32
    %c0_i32_0 = arith.constant 0 : i32
    %c0_i32_1 = arith.constant 0 : i32
    return %c0_i32, %c0_i32_0 : i32, i32
  }
  func.func @transform_3(%arg0: i32) -> (i32, i32, i32, i32) {
    %c0_i32 = arith.constant 0 : i32
    %c0_i32_0 = arith.constant 0 : i32
    %c0_i32_1 = arith.constant 0 : i32
    %c0_i32_2 = arith.constant 0 : i32
    %c0_i32_3 = arith.constant 0 : i32
    return %c0_i32, %c0_i32_0, %c0_i32_1, %c0_i32_2 : i32, i32, i32, i32
  }
  func.func @transform_4(%arg0: i32) -> (i32, i32) {
    %c0_i32 = arith.constant 0 : i32
    %c0_i32_0 = arith.constant 0 : i32
    %c0_i32_1 = arith.constant 0 : i32
    return %c0_i32, %c0_i32_0 : i32, i32
  }
  func.func @transform_5(%arg0: i32) -> (i32, i32) {
    %c0_i32 = arith.constant 0 : i32
    %c0_i32_0 = arith.constant 0 : i32
    %c0_i32_1 = arith.constant 0 : i32
    return %c0_i32, %c0_i32_0 : i32, i32
  }
  func.func @transform_6(%arg0: i32) -> (i32, i32) {
    %c0_i32 = arith.constant 0 : i32
    %c0_i32_0 = arith.constant 0 : i32
    %c0_i32_1 = arith.constant 0 : i32
    return %c0_i32, %c0_i32_0 : i32, i32
  }
  func.func @transform_7(%arg0: i32) -> (i32, i32) {
    %c0_i32 = arith.constant 0 : i32
    %c0_i32_0 = arith.constant 0 : i32
    %c0_i32_1 = arith.constant 0 : i32
    return %c0_i32, %c0_i32_0 : i32, i32
  }
  func.func @transform_8(%arg0: i32) -> (i32, i32) {
    %c0_i32 = arith.constant 0 : i32
    %c0_i32_0 = arith.constant 0 : i32
    %c0_i32_1 = arith.constant 0 : i32
    return %c0_i32, %c0_i32_0 : i32, i32
  }
  func.func @transform_9(%arg0: i32) -> (i32, i32, i32) {
    %c0_i32 = arith.constant 0 : i32
    %c0_i32_0 = arith.constant 0 : i32
    %c0_i32_1 = arith.constant 0 : i32
    return %arg0, %c0_i32, %c0_i32_0 : i32, i32, i32
  }
}

</mosaic_0001>

<bundles_post_ra>
// kernel: secat_bottleneckx_pallas.1
= control target key start
LH: loop header
LB: loop body
LE: loop exit
PB: predicated region body
PF: predicated region fallthrough
CT: control target
= control target key end

     0   :  { %v4358_v3 = vmov 0.0   ;;  %v4355_v4 = vmov 0   ;;  %vm101_vm0 = vcmask 523264   ;;  %v4357_v34 = vmov 1   ;;  %s2861_s10 = smov 1   ;;  %s2862_s11 = smov 127   ;;  %s4345_s0 = inlined_call_operand.vmem [shape: f32[2,64,256], index: 0, kind: input, shape index: {}]   ;;  %s4346_s5 = inlined_call_operand.vmem [shape: f32[64,3], index: 5, kind: input, shape index: {}]   ;;  %s4347_s3 = inlined_call_operand.vmem [shape: f32[3,3,16,1], index: 3, kind: input, shape index: {}]   ;;  %s4348_s2 = inlined_call_operand.vmem [shape: f32[16,64], index: 2, kind: input, shape index: {}]   ;;  %s4349_s4 = inlined_call_operand.vmem [shape: f32[64,16], index: 4, kind: input, shape index: {}]   ;;  %s4350_s1 = inlined_call_operand.vmem [shape: f32[2,32,1], index: 1, kind: input, shape index: {}]   ;;  %s4351_s7 = inlined_call_operand.vmem [shape: f32[4,32], index: 7, kind: input, shape index: {}]   ;;  %s4352_s6 = inlined_call_operand.vmem [shape: f32[4,64], index: 6, kind: input, shape index: {}]   ;;  %s4353_s8 = inlined_call_operand.vmem [shape: f32[64,4], index: 8, kind: input, shape index: {}]   ;;  %s4354_s9 = inlined_call_operand.vmem [shape: f32[2,64,256], index: 9, kind: output, shape index: {}]  }
   0x1   :  { %v82_v0 = vld [vmem:[%s4345_s0 + $0x78] sm:$0xff]  ;;  %v81_v1 = vld [vmem:[%s4345_s0 + $0x70] sm:$0xff]  ;;  %v80_v2 = vld [vmem:[%s4345_s0 + $0x68] sm:$0xff]  ;;  %172 = vmatprep.mubr.f32.mxu0 %v4358_v3  ;;  %2742 = vset.pattern.permute.xlu0 %v4355_v4  ;;  %s2864_s24 = smov 112   ;;  %s2865_s27 = smov 126   ;;  %vm513_vm11 = vcmask 130048  }
   0x2   :  { %124 = vmatprep.subr.mxu0 %v82_v0  ;;  %v79_v5 = vld [vmem:[%s4345_s0 + $0x60] sm:$0xff]  ;;  %2743 = vset.pattern.permute.xlu1 %v4355_v4  ;;  %v78_v6 = vld [vmem:[%s4345_s0 + $0x58] sm:$0xff]  ;;  %v77_v7 = vld [vmem:[%s4345_s0 + $0x50] sm:$0xff]  ;;  %vm2866_vm12 = vmmov 0   ;;  %vm791_vm13 = vcmask 261120   ;;  %vm947_vm14 = vcmask 31744  }
   0x3   :  { %125 = vmatpush1.msra.mxu0 %v81_v1  ;;  %602 = vmatprep.mubr.f32.mxu1 %v4358_v3  ;;  %v76_v8 = vld [vmem:[%s4345_s0 + $0x48] sm:$0xff]  ;;  %v75_v9 = vld [vmem:[%s4345_s0 + $0x40] sm:$0xff]  ;;  %v74_v10 = vld [vmem:[%s4345_s0 + $0x38] sm:$0xff]  ;;  %v32_v1 = vlaneseq  ;;  %vm972_vm15 = vcmask 1043456  }
   0x4   :  { %126 = vmatprep.subr.mxu0 %v80_v2  ;;  %v2952_v11 = vld [vmem:[%s4346_s5 + $0x8] sm:$0xff]  ;;  %v73_v12 = vld [vmem:[%s4345_s0 + $0x30] sm:$0xff]  ;;  %v2969_v15 = vld [vmem:[%s4346_s5] sm:$0xff] }
   0x5   :  { %127 = vmatpush1.msra.mxu0 %v79_v5  ;;  %98 = vperm.xlu0 %2742, %v2952_v11   ;;  %v2961_v13 = vld [vmem:[%s4347_s3 + $0x8] sm:$0xff]  ;;  %v71_v16 = vld [vmem:[%s4345_s0 + $0x20] sm:$0xff]  ;;  %v2978_v17 = vld [vmem:[%s4347_s3 + $0x18] sm:$0xff]  ;;  %v3146_v5 = vand.u32 127, %v32_v1 }
   0x6   :  { %128 = vmatprep.subr.mxu0 %v78_v6  ;;  %v72_v14 = vld [vmem:[%s4345_s0 + $0x28] sm:$0xff]  ;;  %232 = vperm.xlu1 %2743, %v2961_v13   ;;  %v70_v18 = vld [vmem:[%s4345_s0 + $0x18] sm:$0xff]  ;;  %v69_v19 = vld [vmem:[%s4345_s0 + $0x10] sm:$0xff] }
   0x7   :  { %129 = vmatpush1.msra.mxu0 %v77_v7  ;;  %v68_v20 = vld [vmem:[%s4345_s0 + $0x8] sm:$0xff]  ;;  %v2993_v21 = vld [vmem:[%s4347_s3] sm:$0xff]  ;;  %v3002_v23 = vld [vmem:[%s4347_s3 + $0x10] sm:$0xff]  ;;  %vm197_vm1 = vcmp.lt.s32.totalorder %v3146_v5, 1  ;;  %vm214_vm3 = vcmp.lt.s32.totalorder %v3146_v5, 127  ;;  %vm407_vm7 = vcmp.lt.s32.totalorder %v3146_v5, 16 }
   0x8   :  { %130 = vmatprep.subr.mxu0 %v76_v8  ;;  %v67_v22 = vld [vmem:[%s4345_s0] sm:$0xff]  ;;  %v3013_v25 = vld [vmem:[%s4347_s3 + $0x28] sm:$0xff]  ;;  %v3031_v28 = vld [vmem:[%s4347_s3 + $0x78] sm:$0xff]  ;;  %v3151_v8 = vadd.s32 128, %v3146_v5  ;;  %vm63_vm8 = vcmp.ge.s32.totalorder %v3146_v5, 16  ;;  %vm428_vm9 = vcmp.lt.s32.totalorder %v3146_v5, 112 }
   0x9   :  { %131 = vmatpush1.msra.mxu0 %v75_v9  ;;  %93 = vperm.xlu0 %2742, %v2969_v15   ;;  %v3007_v24 = vld [vmem:[%s4348_s2] sm:$0xff]  ;;  %v3021_v26 = vld [vmem:[%s4347_s3 + $0x68] sm:$0xff]  ;;  %v3050_v31 = vld [vmem:[%s4347_s3 + $0x70] sm:$0xff] }
   0xa   :  { %132 = vmatprep.subr.mxu0 %v74_v10  ;;  %249 = vperm.xlu1 %2743, %v2978_v17   ;;  %v88_v27 = vld [vmem:[%s4348_s2 + $0x8] sm:$0xff]  ;;  %v3038_v29 = vld [vmem:[%s4347_s3 + $0x20] sm:$0xff]  ;;  %v3107_v51 = vld [vmem:[%s4347_s3 + $0x50] sm:$0xff]  ;;  %v39_v10 = vand.u32 15, %v3146_v5  ;;  %vm66_vm10 = vcmp.lt.s32.totalorder %v3151_v8, 240 }
   0xb   :  { %133 = vmatpush1.msra.mxu0 %v73_v12  ;;  %v3044_v30 = vld [vmem:[%s4347_s3 + $0x60] sm:$0xff]  ;;  %v3056_v32 = vld [vmem:[%s4347_s3 + $0x88] sm:$0xff]  ;;  %4373 = vst [vmem:[#allocation3_spill] sm:$0xff] %v3107_v51  ;;  %v3114_v52 = vld [vmem:[%s4347_s3 + $0x38] sm:$0xff] }
   0xc   :  { %134 = vmatprep.subr.mxu0 %v72_v14  ;;  %v3062_v33 = vld [vmem:[%s4347_s3 + $0x80] sm:$0xff]  ;;  %v3092_v49 = vld [vmem:[%s4347_s3 + $0x48] sm:$0xff]  ;;  %v3121_v53 = vld [vmem:[%s4347_s3 + $0x30] sm:$0xff]  ;;  %v46_v14 = vand.u32 15, %v3151_v8  ;;  %vm3156_vm2 = vcmp.ge.s32.totalorder %v39_v10, 1  ;;  %vm3177_vm5 = vcmp.le.s32.totalorder %v39_v10, 14 }
   0xd   :  { %135 = vmatpush1.msra.mxu0 %v71_v16  ;;  %227 = vperm.xlu0 %2742, %v2993_v21   ;;  %v3100_v50 = vld [vmem:[%s4347_s3 + $0x40] sm:$0xff]  ;;  %4374 = vst [vmem:[#allocation4_spill] sm:$0xff] %v3121_v53  ;;  %v3127_v54 = vld [vmem:[%s4347_s3 + $0x58] sm:$0xff]  ;;  %s2863_s3 = smov 16  }
   0xe   :  { %136 = vmatprep.subr.mxu0 %v70_v18  ;;  %244 = vperm.xlu1 %2743, %v3002_v23   ;;  %4372 = vst [vmem:[#allocation2_spill] sm:$0xff] %v3100_v50  ;;  %4375 = vst [vmem:[#allocation5_spill] sm:$0xff] %v3127_v54  ;;  %v4376_v18 = vmov 0  ;;  %vm3169_vm4 = vcmp.ge.s32.totalorder %v46_v14, 1  ;;  %vm3204_vm6 = vcmp.le.s32.totalorder %v46_v14, 14 }
   0xf   :  { %137 = vmatpush1.msra.mxu0 %v69_v19  ;;  %v4377_v18 = vsel %vm3156_vm2, 4294967295, %v4376_v18 }
  0x10   :  { %138 = vmatprep.subr.mxu0 %v68_v20  ;;  %4378 = vst [vmem:[#allocation6_spill] sm:$0xff] %v4377_v18 }
  0x11   :  { %139 = vmatpush1.msra.mxu0 %v67_v22  ;;  %270 = vperm.xlu0 %2742, %v3013_v25  }
  0x12   :  { %2388 = vmatmul.mubr.msk.f32.vlgmr.msra.gmra.mxu0 %vm101_vm0, %v3007_v24  ;;  %350 = vperm.xlu1 %2743, %v3021_v26  }
  0x13   :  { %178 = vmatprep.mubr.f32.mxu0 %v4358_v3 }
  0x15   :  { %367 = vperm.xlu0 %2742, %v3031_v28  }
  0x16   :  { %2389 = vmatmul.mubr.msk.f32.gmra.mxu0 %vm101_vm0, %v88_v27  ;;  %265 = vperm.xlu1 %2743, %v3038_v29  }
  0x19   :  { %345 = vperm.xlu0 %2742, %v3044_v30  }
  0x1a   :  { %362 = vperm.xlu1 %2743, %v3050_v31  }
  0x1d   :  { %388 = vperm.xlu0 %2742, %v3056_v32  }
  0x1e   :  { %383 = vperm.xlu1 %2743, %v3062_v33  }
  0x21   :  { %2744 = vset.pattern.permute.xlu0 %v4357_v34 }
  0x80   :  { %v99_v35 = vpop.permute.xlu0 %98 }
  0x81   :  { %v3130_v55 = vpop.permute.xlu1 %232 }
  0x84   :  { %v94_v36 = vpop.permute.xlu0 %93 }
  0x85   :  { %v3132_v56 = vpop.permute.xlu1 %249 }
  0x88   :  { %v228_v57 = vpop.permute.xlu0 %227 }
  0x89   :  { %v245_v58 = vpop.permute.xlu1 %244 }
  0x8c   :  { %v3134_v59 = vpop.permute.xlu0 %270 }
  0x8d   :  { %v3136_v60 = vpop.permute.xlu1 %350 }
  0x90   :  { %v3138_v61 = vpop.permute.xlu0 %367 }
  0x91   :  { %v266_v62 = vpop.permute.xlu1 %265 }
  0x94   :  { %v3140_v63 = vpop.permute.xlu0 %345 }
  0x95   :  { %v3142_v0 = vpop.permute.xlu1 %362 }
  0x98   :  { %v3148_v6 = vpop.permute.xlu0 %388 }
  0x99   :  { %v3144_v2 = vpop.permute.xlu1 %383 }
  0xd2   :  { %v174_v37 = vpop.f32.mrf.mxu0 }
  0xd3   :  { %v175_v38 = vadd.f32 %v174_v37, %v94_v36 }
  0xd4   :  { %v176_v39 = vpop.f32.mrf.mxu0 }
  0xd5   :  { %v3067_v40 = vmax.f32 %v175_v38, 0.0  ;;  %v177_v41 = vadd.f32 %v176_v39, %v94_v36  ;;  %v4381_v38 = vmov 0 }
  0xd6   :  { %v180_v42 = vpop.f32.mrf.mxu0  ;;  %v4382_v38 = vsel %vm3177_vm5, 4294967295, %v4381_v38 }
  0xd7   :  { %v3069_v43 = vmax.f32 %v177_v41, 0.0  ;;  %v181_v44 = vadd.f32 %v180_v42, %v99_v35  ;;  %189 = vrot.lane.b32.xlu1 %v3067_v40, %s2861_s10  ;;  %4383 = vst [vmem:[#allocation7_spill] sm:$0xff] %v4382_v38  ;;  %v252_v34 = vmul.f32 %v245_v58, %v3067_v40 }
  0xd8   :  { %v182_v45 = vpop.f32.mrf.mxu0 }
  0xd9   :  { %v3073_v46 = vmax.f32 %v181_v44, 0.0  ;;  %v183_v47 = vadd.f32 %v182_v45, %v99_v35  ;;  %193 = vrot.lane.b32.xlu0 %v3069_v43, %s2861_s10 }
  0xdb   :  { %v3077_v48 = vmax.f32 %v183_v47, 0.0  ;;  %191 = vrot.lane.b32.xlu1 %v3073_v46, %s2861_s10  ;;  %v254_v44 = vmul.f32 %v3132_v56, %v3073_v46 }
  0xdd   :  { %195 = vrot.lane.b32.xlu0 %v3077_v48, %s2861_s10 }
  0xdf   :  { %208 = vrot.lane.b32.xlu1 %v3073_v46, %s2862_s11 }
  0xe1   :  { %212 = vrot.lane.b32.xlu0 %v3077_v48, %s2862_s11 }
  0xe3   :  { %210 = vrot.lane.b32.xlu1 %v3069_v43, %s2862_s11 }
  0xe5   :  { %206 = vrot.lane.b32.xlu0 %v3067_v40, %s2862_s11 }
  0xe7   :  { %308 = vperm.xlu1 %2743, %v3092_v49  }
  0xe9   :  { %446 = vperm.xlu0 %2744, %v2952_v11  }
  0xeb   :  { %303 = vperm.xlu1 %2743, %v3100_v50  }
  0xed   :  { %442 = vperm.xlu0 %2744, %v2969_v15  }
  0xef   :  { %324 = vperm.xlu1 %2743, %v3107_v51  }
  0xf1   :  { %2745 = vset.pattern.permute.xlu0 %v4355_v4 }
  0xf2   :  { %291 = vperm.xlu0 %2745, %v3114_v52  }
  0xf6   :  { %286 = vperm.xlu0 %2745, %v3121_v53  }
  0xfa   :  { %329 = vperm.xlu0 %2745, %v3127_v54  }
 0x149   :  { %v190_v7 = vpop.permute.xlu1 %189 }
 0x14b   :  { %v194_v9 = vpop.permute.xlu0 %193 }
 0x14c   :  { %v200_v19 = vsel %vm197_vm1, %v194_v9, %v190_v7  ;;  %v198_v36 = vsel %vm197_vm1, %v190_v7, %v194_v9 }
 0x14d   :  { %v192_v12 = vpop.permute.xlu1 %191  ;;  %v3183_v39 = vsel %vm3156_vm2, %v200_v19, 0.0  ;;  %v3191_v45 = vsel %vm3169_vm4, %v198_v36, 0.0 }
 0x14e   :  { %v235_v1 = vmul.f32 %v228_v57, %v3183_v39  ;;  %v236_v14 = vmul.f32 %v228_v57, %v3191_v45  ;;  %v371_v57 = vmul.f32 %v3142_v0, %v3069_v43 }
 0x14f   :  { %v196_v16 = vpop.permute.xlu0 %195 }
 0x150   :  { %v201_v20 = vsel %vm197_vm1, %v196_v16, %v192_v12  ;;  %v199_v19 = vsel %vm197_vm1, %v192_v12, %v196_v16  ;;  %v354_v16 = vmul.f32 %v3140_v63, %v3191_v45 }
 0x151   :  { %v3166_v22 = vsel %vm3156_vm2, %v201_v20, 0.0  ;;  %v209_v27 = vpop.permute.xlu1 %208 }
 0x152   :  { %v237_v37 = vmul.f32 %v3130_v55, %v3166_v22  ;;  %v355_v7 = vmul.f32 %v3136_v60, %v3166_v22 }
 0x153   :  { %v213_v41 = vpop.permute.xlu0 %212 }
 0x154   :  { %v216_v42 = vsel %vm214_vm3, %v209_v27, %v213_v41  ;;  %v258_v9 = vadd.f32 %v254_v44, %v237_v37  ;;  %v218_v51 = vsel %vm214_vm3, %v213_v41, %v209_v27 }
 0x155   :  { %v3195_v47 = vsel %vm3177_vm5, %v216_v42, 0.0  ;;  %v211_v36 = vpop.permute.xlu1 %210  ;;  %v372_v42 = vmul.f32 %v3138_v61, %v3073_v46  ;;  %v222_v27 = vsel %vm3204_vm6, %v218_v51, 0.0 }
 0x156   :  { %v275_v10 = vmul.f32 %v3134_v59, %v3195_v47  ;;  %v393_v12 = vmul.f32 %v3148_v6, %v3195_v47 }
 0x157   :  { %v207_v4 = vpop.permute.xlu0 %206 }
 0x158   :  { %v215_v37 = vsel %vm214_vm3, %v207_v4, %v211_v36  ;;  %v217_v44 = vsel %vm214_vm3, %v211_v36, %v207_v4  ;;  %v279_v3 = vadd.f32 %v275_v10, %v258_v9  ;;  %v376_v4 = vadd.f32 %v372_v42, %v355_v7 }
 0x159   :  { %v219_v18 = vsel %vm3177_vm5, %v215_v37, 0.0  ;;  %v220_v54 = vsel %vm3204_vm6, %v217_v44, 0.0  ;;  %v256_v9 = vadd.f32 %v252_v34, %v235_v1  ;;  %v205_v36 = vsel %vm3169_vm4, %v199_v19, 0.0 }
 0x15a   :  { %401 = vrot.lane.b32.xlu0 %v279_v3, %s2863_s3  ;;  %v273_v10 = vmul.f32 %v266_v62, %v219_v18  ;;  %v253_v37 = vmul.f32 %v245_v58, %v3069_v43  ;;  %v397_v38 = vadd.f32 %v393_v12, %v376_v4  ;;  %v392_v44 = vmul.f32 %v3144_v2, %v220_v54 }
 0x15b   :  { %v274_v50 = vmul.f32 %v266_v62, %v220_v54  ;;  %v238_v3 = vmul.f32 %v3130_v55, %v205_v36  ;;  %v375_v34 = vadd.f32 %v371_v57, %v354_v16  ;;  %v255_v58 = vmul.f32 %v3132_v56, %v3077_v48 }
 0x15c   :  { %v277_v53 = vadd.f32 %v273_v10, %v256_v9  ;;  %v257_v41 = vadd.f32 %v253_v37, %v236_v14  ;;  %v276_v19 = vmul.f32 %v3134_v59, %v222_v27  ;;  %v356_v62 = vmul.f32 %v3136_v60, %v205_v36 }
 0x15d   :  { %v396_v1 = vadd.f32 %v392_v44, %v375_v34  ;;  %v259_v51 = vadd.f32 %v255_v58, %v238_v3  ;;  %v353_v56 = vmul.f32 %v3140_v63, %v3183_v39  ;;  %v370_v60 = vmul.f32 %v3142_v0, %v3067_v40 }
 0x15e   :  { %422 = vrot.lane.b32.xlu0 %v397_v38, %s2864_s24  ;;  %399 = vrot.lane.b32.xlu1 %v277_v53, %s2863_s3  ;;  %v278_v7 = vadd.f32 %v274_v50, %v257_v41  ;;  %v373_v53 = vmul.f32 %v3138_v61, %v3077_v48  ;;  %v394_v50 = vmul.f32 %v3148_v6, %v222_v27 }
 0x15f   :  { %v280_v38 = vadd.f32 %v276_v19, %v259_v51  ;;  %v391_v16 = vmul.f32 %v3144_v2, %v219_v18  ;;  %v374_v61 = vadd.f32 %v370_v60, %v353_v56 }
 0x160   :  { %v377_v59 = vadd.f32 %v373_v53, %v356_v62 }
 0x161   :  { %v395_v6 = vadd.f32 %v391_v16, %v374_v61 }
 0x162   :  { %424 = vrot.lane.b32.xlu0 %v396_v1, %s2864_s24  ;;  %403 = vrot.lane.b32.xlu1 %v278_v7, %s2863_s3  ;;  %v309_v42 = vpop.permute.xlu1 %308  ;;  %v398_v14 = vadd.f32 %v394_v50, %v377_v59 }
 0x163   :  { %v313_v34 = vmul.f32 %v309_v42, %v3073_v46  ;;  %v314_v41 = vmul.f32 %v309_v42, %v3077_v48 }
 0x164   :  { %v3244_v55 = vpop.permute.xlu0 %446 }
 0x166   :  { %405 = vrot.lane.b32.xlu1 %v280_v38, %s2863_s3  ;;  %v304_v4 = vpop.permute.xlu1 %303 }
 0x167   :  { %v311_v0 = vmul.f32 %v304_v4, %v3067_v40  ;;  %v312_v44 = vmul.f32 %v304_v4, %v3069_v43 }
 0x168   :  { %v3254_v12 = vpop.permute.xlu0 %442 }
 0x16a   :  { %426 = vrot.lane.b32.xlu1 %v398_v14, %s2864_s24  ;;  %v325_v63 = vpop.permute.xlu1 %324 }
 0x16b   :  { %v332_v1 = vmul.f32 %v325_v63, %v219_v18  ;;  %v333_v7 = vmul.f32 %v325_v63, %v220_v54 }
 0x16d   :  { %v292_v9 = vpop.permute.xlu0 %291 }
 0x16e   :  { %420 = vrot.lane.b32.xlu1 %v395_v6, %s2864_s24  ;;  %v296_v10 = vmul.f32 %v292_v9, %v3166_v22  ;;  %v297_v57 = vmul.f32 %v292_v9, %v205_v36 }
 0x170   :  { %v317_v62 = vadd.f32 %v313_v34, %v296_v10  ;;  %v318_v22 = vadd.f32 %v314_v41, %v297_v57 }
 0x171   :  { %v287_v37 = vpop.permute.xlu0 %286 }
 0x172   :  { %v294_v3 = vmul.f32 %v287_v37, %v3183_v39  ;;  %v295_v2 = vmul.f32 %v287_v37, %v3191_v45 }
 0x174   :  { %v315_v58 = vadd.f32 %v311_v0, %v294_v3  ;;  %v316_v19 = vadd.f32 %v312_v44, %v295_v2 }
 0x175   :  { %v330_v36 = vpop.permute.xlu0 %329 }
 0x176   :  { %v336_v51 = vadd.f32 %v332_v1, %v315_v58  ;;  %v337_v38 = vadd.f32 %v333_v7, %v316_v19  ;;  %v334_v40 = vmul.f32 %v330_v36, %v3195_v47  ;;  %v335_v43 = vmul.f32 %v330_v36, %v222_v27 }
 0x178   :  { %v338_v53 = vadd.f32 %v334_v40, %v317_v62  ;;  %v339_v39 = vadd.f32 %v335_v43, %v318_v22  ;;  %v3303_v43 = vld [vmem:[%s4346_s5 + $0x30] sm:$0xff] }
 0x1cc   :  { %v402_v45 = vpop.permute.xlu0 %401 }
 0x1d0   :  { %v400_v50 = vpop.permute.xlu1 %399  ;;  %v423_v54 = vpop.permute.xlu0 %422 }
 0x1d4   :  { %v404_v56 = vpop.permute.xlu1 %403  ;;  %v425_v10 = vpop.permute.xlu0 %424 }
 0x1d5   :  { %v410_v18 = vsel %vm407_vm7, %v404_v56, %v400_v50  ;;  %v408_v4 = vsel %vm407_vm7, %v400_v50, %v404_v56  ;;  %v3332_v50 = vld [vmem:[%s4346_s5 + $0x18] sm:$0xff]  ;;  %v3347_v56 = vld [vmem:[%s4349_s4 + $0x10] sm:$0xff] }
 0x1d6   :  { %v412_v60 = vsel %vm63_vm8, %v410_v18, 0.0  ;;  %v417_v44 = vadd.f32 %v408_v4, %v337_v38  ;;  %v3380_v18 = vld [vmem:[%s4349_s4 + $0x20] sm:$0xff] }
 0x1d7   :  { %v416_v57 = vadd.f32 %v412_v60, %v336_v51 }
 0x1d8   :  { %v406_v46 = vpop.permute.xlu1 %405 }
 0x1d9   :  { %v411_v48 = vsel %vm407_vm7, %v406_v46, %v402_v45  ;;  %v409_v47 = vsel %vm407_vm7, %v402_v45, %v406_v46  ;;  %v3339_v45 = vld [vmem:[%s4346_s5 + $0x38] sm:$0xff]  ;;  %v3356_v46 = vld [vmem:[%s4346_s5 + $0x20] sm:$0xff] }
 0x1da   :  { %v414_v27 = vsel %vm63_vm8, %v411_v48, 0.0  ;;  %v419_v14 = vadd.f32 %v409_v47, %v339_v39  ;;  %v3327_v39 = vld [vmem:[%s4349_s4 + $0x8] sm:$0xff]  ;;  %v3364_v48 = vld [vmem:[%s4349_s4 + $0x18] sm:$0xff] }
 0x1db   :  { %v418_v42 = vadd.f32 %v414_v27, %v338_v53  ;;  %v3315_v53 = vld [vmem:[%s4346_s5 + $0x28] sm:$0xff] }
 0x1dc   :  { %v427_v59 = vpop.permute.xlu1 %426  ;;  %v3391_v47 = vld [vmem:[%s4349_s4 + $0x28] sm:$0xff] }
 0x1dd   :  { %v430_v16 = vsel %vm428_vm9, %v423_v54, %v427_v59  ;;  %v432_v61 = vsel %vm428_vm9, %v427_v59, %v423_v54  ;;  %v3373_v54 = vld [vmem:[%s4346_s5 + $0x10] sm:$0xff] }
 0x1de   :  { %v436_v6 = vsel %vm66_vm10, %v432_v61, 0.0  ;;  %v439_v9 = vadd.f32 %v430_v16, %v418_v42  ;;  %4387 = vst [vmem:[#allocation8_spill] sm:$0xff] %v3373_v54 }
 0x1df   :  { %v440_v63 = vadd.f32 %v436_v6, %v419_v14 }
 0x1e0   :  { %v421_v37 = vpop.permute.xlu1 %420  ;;  %v451_v0 = vadd.f32 %v3244_v55, %v439_v9 }
 0x1e1   :  { %v429_v3 = vsel %vm428_vm9, %v421_v37, %v425_v10  ;;  %v431_v2 = vsel %vm428_vm9, %v425_v10, %v421_v37  ;;  %v452_v34 = vadd.f32 %v3244_v55, %v440_v63  ;;  %v4386_v55 = vmov 0.0  }
 0x1e2   :  { %v434_v41 = vsel %vm66_vm10, %v431_v2, 0.0  ;;  %v437_v1 = vadd.f32 %v429_v3, %v416_v57  ;;  %v455_v7 = vmax.f32 %v451_v0, 0.0 }
 0x1e3   :  { %v438_v58 = vadd.f32 %v434_v41, %v417_v44  ;;  %v456_v19 = vmax.f32 %v452_v34, 0.0 }
 0x1e4   :  { %v449_v62 = vadd.f32 %v3254_v12, %v437_v1 }
 0x1e5   :  { %566 = vmatprep.subr.mxu1 %v456_v19  ;;  %v654_v22 = vadd.f32 %v456_v19, %v455_v7  ;;  %v450_v36 = vadd.f32 %v3254_v12, %v438_v58  ;;  %v3310_v12 = vld [vmem:[%s4349_s4] sm:$0xff]  ;;  %v3475_v58 = vld [vmem:[%s4345_s0 + $0xf8] sm:$0xff]  ;;  %v3481_v19 = vld [vmem:[%s4345_s0 + $0xf0] sm:$0xff] }
 0x1e6   :  { %567 = vmatpush1.msra.mxu1 %v455_v7  ;;  %v453_v51 = vmax.f32 %v449_v62, 0.0  ;;  %2600 = vmatprep.mubr.msk.f32.mxu0 %vm513_vm11, %v3310_v12  ;;  %v789_v7 = vld [vmem:[%s4352_s6] sm:$0xf]  ;;  %v3486_v62 = vld [vmem:[%s4345_s0 + $0xe8] sm:$0xff] }
 0x1e7   :  { %655 = vadd.xlane.f32.xlu1 %v654_v22  ;;  %v454_v38 = vmax.f32 %v450_v36, 0.0  ;;  %v3495_v36 = vld [vmem:[%s4345_s0 + $0xe0] sm:$0xff] }
 0x1e9   :  { %568 = vmatprep.subr.mxu1 %v454_v38  ;;  %v651_v40 = vadd.f32 %v454_v38, %v453_v51  ;;  %v3508_v38 = vld [vmem:[%s4345_s0 + $0xd0] sm:$0xff] }
 0x1ea   :  { %569 = vmatpush1.msra.mxu1 %v453_v51  ;;  %v3501_v51 = vld [vmem:[%s4345_s0 + $0xd8] sm:$0xff] }
 0x1eb   :  { %652 = vadd.xlane.f32.xlu0 %v651_v40  ;;  %2612 = vmatprep.subr.mxu1 %v4386_v55  ;;  %v3514_v40 = vld [vmem:[%s4345_s0 + $0xc8] sm:$0xff] }
 0x1ec   :  { %2406 = vmatmul.mubr.msk.f32.vlgmr.msra.gmra.mxu1 %vm513_vm11, %v3310_v12 }
 0x1ed   :  { %608 = vmatprep.mubr.f32.mxu1 %v4386_v55 }
 0x1f0   :  { %2407 = vmatmul.mubr.msk.f32.gmra.mxu1 %vm513_vm11, %v3327_v39 }
 0x1f1   :  { %614 = vmatprep.mubr.f32.mxu1 %v4386_v55 }
 0x1f4   :  { %2408 = vmatmul.mubr.msk.f32.gmra.mxu1 %vm513_vm11, %v3347_v56 }
 0x1f5   :  { %620 = vmatprep.mubr.f32.mxu1 %v4386_v55 }
 0x1f8   :  { %672 = vrot.lane.b32.xlu1 %v3303_v43, %s2865_s27  ;;  %2409 = vmatmul.mubr.msk.f32.gmra.mxu1 %vm513_vm11, %v3364_v48 }
 0x1f9   :  { %626 = vmatprep.mubr.f32.mxu1 %v4386_v55 }
 0x1fc   :  { %670 = vrot.lane.b32.xlu1 %v3315_v53, %s2865_s27  ;;  %2410 = vmatmul.mubr.msk.f32.gmra.mxu1 %vm513_vm11, %v3380_v18 }
 0x1fd   :  { %632 = vmatprep.mubr.f32.mxu1 %v4386_v55 }
 0x200   :  { %666 = vrot.lane.b32.xlu1 %v3332_v50, %s2865_s27  ;;  %2411 = vmatmul.mubr.msk.f32.gmra.mxu1 %vm513_vm11, %v3391_v47 }
 0x201   :  { %674 = vrot.lane.b32.xlu0 %v3339_v45, %s2865_s27  ;;  %638 = vmatprep.mubr.f32.mxu1 %v4386_v55 }
 0x204   :  { %662 = vrot.lane.b32.xlu1 %v2952_v11, %s2865_s27 }
 0x205   :  { %668 = vrot.lane.b32.xlu0 %v3356_v46, %s2865_s27 }
 0x208   :  { %1266 = vperm.xlu1 %2743, %v2952_v11   ;;  %v3402_v11 = vld [vmem:[%s4349_s4 + $0x30] sm:$0xff] }
 0x209   :  { %664 = vrot.lane.b32.xlu0 %v3373_v54, %s2865_s27  ;;  %2412 = vmatmul.mubr.msk.f32.gmra.mxu1 %vm513_vm11, %v3402_v11 }
 0x20a   :  { %644 = vmatprep.mubr.f32.mxu1 %v4386_v55 }
 0x20c   :  { %1397 = vperm.xlu1 %2743, %v2961_v13   ;;  %v3412_v13 = vld [vmem:[%s4349_s4 + $0x38] sm:$0xff] }
 0x20d   :  { %660 = vrot.lane.b32.xlu0 %v2969_v15, %s2865_s27  ;;  %2413 = vmatmul.mubr.msk.f32.gmra.mxu1 %vm513_vm11, %v3412_v13 }
 0x20e   :  { %2620 = vmatprep.mubr.msk.f32.mxu1 %vm2866_vm12, %v4386_v55 }
 0x210   :  { %1413 = vperm.xlu1 %2743, %v2978_v17  }
 0x211   :  { %1261 = vperm.xlu0 %2745, %v2969_v15  }
 0x214   :  { %1408 = vperm.xlu1 %2743, %v3002_v23  }
 0x215   :  { %1392 = vperm.xlu0 %2745, %v2993_v21  }
 0x218   :  { %1509 = vperm.xlu1 %2743, %v3021_v26   ;;  %v85_v26 = vld [vmem:[%s4350_s1 + $0x10] sm:$0xff] }
 0x219   :  { %1433 = vperm.xlu0 %2745, %v3013_v25   ;;  %v86_v25 = vld [vmem:[%s4350_s1 + $0x18] sm:$0xff] }
 0x21a   :  { %2613 = vmatpush3.msra.mxu1 %v86_v25  ;;  %v3540_v25 = vld [vmem:[%s4345_s0 + $0xa8] sm:$0xff] }
 0x21b   :  { %2614 = vmatprep.subr.mxu1 %v4386_v55 }
 0x21c   :  { %1428 = vperm.xlu1 %2743, %v3038_v29   ;;  %2615 = vmatpush3.msra.mxu1 %v85_v26  ;;  %v83_v29 = vld [vmem:[%s4350_s1] sm:$0xff] }
 0x21d   :  { %1525 = vperm.xlu0 %2745, %v3031_v28   ;;  %2616 = vmatprep.subr.mxu1 %v4386_v55  ;;  %v84_v28 = vld [vmem:[%s4350_s1 + $0x8] sm:$0xff] }
 0x21e   :  { %2617 = vmatpush3.msra.mxu1 %v84_v28  ;;  %v3548_v28 = vld [vmem:[%s4345_s0 + $0xa0] sm:$0xff] }
 0x21f   :  { %2618 = vmatprep.subr.mxu1 %v4386_v55 }
 0x220   :  { %1520 = vperm.xlu1 %2743, %v3050_v31   ;;  %2619 = vmatpush3.msra.mxu1 %v83_v29  ;;  %v3554_v29 = vld [vmem:[%s4345_s0 + $0x98] sm:$0xff] }
 0x221   :  { %1504 = vperm.xlu0 %2745, %v3044_v30   ;;  %v790_v30 = vld [vmem:[%s4351_s7] sm:$0xf] }
 0x222   :  { %2621 = vmatmul.mubr.msk.f32.vlgmr.msra.gmra.mxu1 %vm791_vm13, %v790_v30  ;;  %v3560_v30 = vld [vmem:[%s4345_s0 + $0x90] sm:$0xff] }
 0x224   :  { %1540 = vperm.xlu1 %2743, %v3062_v33  }
 0x225   :  { %1545 = vperm.xlu0 %2745, %v3056_v32  }
 0x270   :  { %v656_v15 = vpop.xlane.xlu1 %655 }
 0x271   :  { %v659_v17 = vmul.f32 0.00390625, %v656_v15 }
 0x273   :  { %2596 = vmatprep.subr.mxu0 %v659_v17 }
 0x274   :  { %v653_v21 = vpop.xlane.xlu0 %652  ;;  %2597 = vmatpush3.msra.mxu0 %v659_v17  ;;  %v673_v27 = vpop.permute.xlu1 %672  ;;  %v3522_v17 = vld [vmem:[%s4345_s0 + $0xc0] sm:$0xff] }
 0x275   :  { %v658_v23 = vmul.f32 0.00390625, %v653_v21  ;;  %v3528_v21 = vld [vmem:[%s4345_s0 + $0xb8] sm:$0xff] }
 0x277   :  { %2598 = vmatprep.subr.mxu0 %v658_v23 }
 0x278   :  { %2599 = vmatpush3.msra.mxu0 %v658_v23  ;;  %v675_v59 = vpop.permute.xlu0 %674  ;;  %v671_v16 = vpop.permute.xlu1 %670  ;;  %v3534_v23 = vld [vmem:[%s4345_s0 + $0xb0] sm:$0xff] }
 0x279   :  { %2601 = vmatmul.mubr.msk.f32.vlgmr.msra.gmra.mxu0 %vm513_vm11, %v3327_v39  ;;  %2623 = vmatprep.subr.mxu0 %v4386_v55 }
 0x27a   :  { %2603 = vmatprep.mubr.msk.f32.mxu0 %vm513_vm11, %v3347_v56 }
 0x27c   :  { %v669_v6 = vpop.permute.xlu0 %668  ;;  %v667_v57 = vpop.permute.xlu1 %666 }
 0x27d   :  { %2604 = vmatmul.mubr.msk.f32.gmra.mxu0 %vm513_vm11, %v3364_v48 }
 0x27e   :  { %2606 = vmatprep.mubr.msk.f32.mxu0 %vm513_vm11, %v3380_v18 }
 0x280   :  { %v665_v0 = vpop.permute.xlu0 %664  ;;  %v663_v2 = vpop.permute.xlu1 %662 }
 0x281   :  { %2607 = vmatmul.mubr.msk.f32.gmra.mxu0 %vm513_vm11, %v3391_v47 }
 0x282   :  { %2609 = vmatprep.mubr.msk.f32.mxu0 %vm513_vm11, %v3402_v11 }
 0x284   :  { %v661_v41 = vpop.permute.xlu0 %660 }
 0x285   :  { %2610 = vmatmul.mubr.msk.f32.gmra.mxu0 %vm513_vm11, %v3412_v13 }
 0x286   :  { %2639 = vmatprep.mubr.msk.f32.mxu0 %vm2866_vm12, %v4386_v55 }
 0x2ac   :  { %v3488_v22 = vpop.f32.mrf.mxu1 }
 0x2ad   :  { %4388 = vst [vmem:[#allocation9_spill] sm:$0xff] %v3488_v22 }
 0x2ae   :  { %v3516_v15 = vpop.f32.mrf.mxu1 }
 0x2af   :  { %4389 = vst [vmem:[#allocation10_spill] sm:$0xff] %v3516_v15 }
 0x2b0   :  { %v3542_v26 = vpop.f32.mrf.mxu1 }
 0x2b1   :  { %4390 = vst [vmem:[#allocation11_spill] sm:$0xff] %v3542_v26 }
 0x339   :  { %v2602_v31 = vpop.f32.mrf.mxu0 }
 0x33a   :  { %v756_v34 = vadd.f32 %v2602_v31, %v663_v2  ;;  %v3566_v31 = vld [vmem:[%s4345_s0 + $0x88] sm:$0xff] }
 0x33b   :  { %v750_v32 = vpop.f32.mrf.mxu0 }
 0x33c   :  { %v751_v1 = vadd.f32 %v750_v32, %v661_v41  ;;  %v3568_v32 = vpop.f32.mrf.mxu1  ;;  %v941_v41 = vld [vmem:[%s4353_s8 + $0x10] sm:$0xff] }
 0x33d   :  { %v2605_v33 = vpop.f32.mrf.mxu0  ;;  %4391 = vst [vmem:[#allocation12_spill] sm:$0xff] %v3568_v32 }
 0x33e   :  { %v766_v44 = vadd.f32 %v2605_v33, %v667_v57  ;;  %v3574_v33 = vld [vmem:[%s4345_s0 + $0x80] sm:$0xff] }
 0x33f   :  { %v760_v42 = vpop.f32.mrf.mxu0 }
 0x340   :  { %v761_v3 = vadd.f32 %v760_v42, %v665_v0 }
 0x341   :  { %v2608_v60 = vpop.f32.mrf.mxu0 }
 0x342   :  { %v776_v10 = vadd.f32 %v2608_v60, %v671_v16 }
 0x343   :  { %v770_v14 = vpop.f32.mrf.mxu0 }
 0x344   :  { %v771_v37 = vadd.f32 %v770_v14, %v669_v6 }
 0x345   :  { %v2611_v61 = vpop.f32.mrf.mxu0 }
 0x346   :  { %v786_v4 = vadd.f32 %v2611_v61, %v675_v59 }
 0x347   :  { %v780_v9 = vpop.f32.mrf.mxu0 }
 0x348   :  { %v781_v63 = vadd.f32 %v780_v9, %v673_v27  ;;  %2624 = vmatpush3.msra.mxu0 %v786_v4  ;;  %v3579_v27 = vpop.f32.mrf.mxu1 }
 0x349   :  { %2625 = vmatprep.subr.mxu0 %v4386_v55  ;;  %4392 = vst [vmem:[#allocation13_spill] sm:$0xff] %v3579_v27 }
 0x34a   :  { %2626 = vmatpush3.msra.mxu0 %v781_v63  ;;  %v3585_v42 = vpop.f32.mrf.mxu1 }
 0x34b   :  { %2627 = vmatprep.subr.mxu0 %v4386_v55  ;;  %4393 = vst [vmem:[#allocation14_spill] sm:$0xff] %v3585_v42 }
 0x34c   :  { %2628 = vmatpush3.msra.mxu0 %v776_v10  ;;  %v3587_v59 = vpop.f32.mrf.mxu1 }
 0x34d   :  { %2629 = vmatprep.subr.mxu0 %v4386_v55  ;;  %4394 = vst [vmem:[#allocation15_spill] sm:$0xff] %v3587_v59 }
 0x34e   :  { %2630 = vmatpush3.msra.mxu0 %v771_v37  ;;  %v3589_v60 = vpop.f32.mrf.mxu1  ;;  %v939_v37 = vld [vmem:[%s4353_s8] sm:$0xff] }
 0x34f   :  { %2631 = vmatprep.subr.mxu0 %v4386_v55  ;;  %4395 = vst [vmem:[#allocation16_spill] sm:$0xff] %v3589_v60  ;;  %2644 = vmatprep.mubr.msk.f32.mxu1 %vm947_vm14, %v939_v37 }
 0x350   :  { %2632 = vmatpush3.msra.mxu0 %v766_v44  ;;  %v3591_v14 = vpop.f32.mrf.mxu1 }
 0x351   :  { %2633 = vmatprep.subr.mxu0 %v4386_v55  ;;  %4396 = vst [vmem:[#allocation17_spill] sm:$0xff] %v3591_v14 }
 0x352   :  { %2634 = vmatpush3.msra.mxu0 %v761_v3  ;;  %v3593_v16 = vpop.f32.mrf.mxu1 }
 0x353   :  { %2635 = vmatprep.subr.mxu0 %v4386_v55  ;;  %4397 = vst [vmem:[#allocation18_spill] sm:$0xff] %v3593_v16 }
 0x354   :  { %2636 = vmatpush3.msra.mxu0 %v756_v34  ;;  %v3595_v61 = vpop.f32.mrf.mxu1  ;;  %v940_v34 = vld [vmem:[%s4353_s8 + $0x8] sm:$0xff] }
 0x355   :  { %2637 = vmatprep.subr.mxu0 %v4386_v55  ;;  %4398 = vst [vmem:[#allocation19_spill] sm:$0xff] %v3595_v61 }
 0x356   :  { %2638 = vmatpush3.msra.mxu0 %v751_v1  ;;  %v3597_v4 = vpop.f32.mrf.mxu1  ;;  %v942_v1 = vld [vmem:[%s4353_s8 + $0x18] sm:$0xff] }
 0x357   :  { %2640 = vmatmul.mubr.msk.f32.vlgmr.msra.gmra.mxu0 %vm101_vm0, %v789_v7  ;;  %1291 = vmatprep.subr.mxu0 %v3475_v58  ;;  %4399 = vst [vmem:[#allocation20_spill] sm:$0xff] %v3597_v4  ;;  %v943_v7 = vld [vmem:[%s4353_s8 + $0x20] sm:$0xff] }
 0x358   :  { %1292 = vmatpush1.msra.mxu0 %v3481_v19  ;;  %1339 = vmatprep.mubr.f32.mxu0 %v4386_v55  ;;  %v3599_v6 = vpop.f32.mrf.mxu1 }
 0x359   :  { %1293 = vmatprep.subr.mxu0 %v3486_v62  ;;  %4400 = vst [vmem:[#allocation21_spill] sm:$0xff] %v3599_v6 }
 0x35a   :  { %1294 = vmatpush1.msra.mxu0 %v3495_v36 }
 0x35b   :  { %1295 = vmatprep.subr.mxu0 %v3501_v51 }
 0x35c   :  { %1296 = vmatpush1.msra.mxu0 %v3508_v38 }
 0x35d   :  { %1297 = vmatprep.subr.mxu0 %v3514_v40 }
 0x35e   :  { %1298 = vmatpush1.msra.mxu0 %v3522_v17 }
 0x35f   :  { %1299 = vmatprep.subr.mxu0 %v3528_v21 }
 0x360   :  { %1300 = vmatpush1.msra.mxu0 %v3534_v23 }
 0x361   :  { %1301 = vmatprep.subr.mxu0 %v3540_v25 }
 0x362   :  { %1302 = vmatpush1.msra.mxu0 %v3548_v28 }
 0x363   :  { %1303 = vmatprep.subr.mxu0 %v3554_v29 }
 0x364   :  { %1304 = vmatpush1.msra.mxu0 %v3560_v30 }
 0x365   :  { %1305 = vmatprep.subr.mxu0 %v3566_v31 }
 0x366   :  { %1306 = vmatpush1.msra.mxu0 %v3574_v33 }
 0x367   :  { %2461 = vmatmul.mubr.msk.f32.vlgmr.msra.gmra.mxu0 %vm101_vm0, %v3007_v24  ;;  %v3601_v24 = vpop.f32.mrf.mxu1 }
 0x368   :  { %2660 = vmatprep.mubr.msk.f32.mxu0 %vm513_vm11, %v3310_v12  ;;  %4401 = vst [vmem:[#allocation22_spill] sm:$0xff] %v3601_v24 }
 0x369   :  { %v3603_v9 = vpop.f32.mrf.mxu1 }
 0x36a   :  { %4402 = vst [vmem:[#allocation23_spill] sm:$0xff] %v3603_v9 }
 0x36b   :  { %v3605_v63 = vpop.f32.mrf.mxu1 }
 0x36c   :  { %4403 = vst [vmem:[#allocation24_spill] sm:$0xff] %v3605_v63 }
 0x36d   :  { %v861_v10 = vpop.f32.mrf.mxu1 }
 0x36f   :  { %v2622_v57 = vpop.f32.mrf.mxu1 }
 0x417   :  { %v934_v0 = vpop.f32.mrf.mxu0 }
 0x418   :  { %v935_v44 = vadd.f32 %v934_v0, %v861_v10  ;;  %v1267_v0 = vpop.permute.xlu1 %1266 }
 0x419   :  { %v2641_v3 = vpop.f32.mrf.mxu0 }
 0x41a   :  { %v938_v2 = vmax.f32 %v935_v44, 0.0 }
 0x41c   :  { %2642 = vmatprep.subr.msk.mxu1 %vm972_vm15, %v938_v2 }
 0x41d   :  { %2643 = vmatpush3.msk.msra.mxu1 %vm972_vm15, %v938_v2 }
 0x41e   :  { %2645 = vmatmul.mubr.msk.f32.vlgmr.msra.gmra.mxu1 %vm947_vm14, %v940_v34  ;;  %2716 = vmatprep.subr.mxu1 %v3475_v58  ;;  %v944_v58 = vld [vmem:[%s4353_s8 + $0x28] sm:$0xff] }
 0x41f   :  { %2724 = vmatpush1.msra.mxu1 %v3481_v19  ;;  %2647 = vmatprep.mubr.msk.f32.mxu1 %vm947_vm14, %v941_v41  ;;  %v945_v19 = vld [vmem:[%s4353_s8 + $0x30] sm:$0xff] }
 0x420   :  { %2717 = vmatprep.subr.mxu1 %v3486_v62  ;;  %v1262_v62 = vpop.permute.xlu0 %1261 }
 0x421   :  { %2725 = vmatpush1.msra.mxu1 %v3495_v36 }
 0x422   :  { %2648 = vmatmul.mubr.msk.f32.gmra.mxu1 %vm947_vm14, %v942_v1  ;;  %2718 = vmatprep.subr.mxu1 %v3501_v51  ;;  %v946_v51 = vld [vmem:[%s4353_s8 + $0x38] sm:$0xff] }
 0x423   :  { %2726 = vmatpush1.msra.mxu1 %v3508_v38  ;;  %2650 = vmatprep.mubr.msk.f32.mxu1 %vm947_vm14, %v943_v7  ;;  %v4408_v7 = vld [vmem:[#allocation2_spill] sm:$0xff] }
 0x424   :  { %2719 = vmatprep.subr.mxu1 %v3514_v40 }
 0x425   :  { %2727 = vmatpush1.msra.mxu1 %v3522_v17 }
 0x426   :  { %2651 = vmatmul.mubr.msk.f32.gmra.mxu1 %vm947_vm14, %v944_v58  ;;  %2720 = vmatprep.subr.mxu1 %v3528_v21  ;;  %v1256_v21 = vld [vmem:[%s4348_s2 + $0x8] sm:$0xff]  ;;  %v4409_v58 = vld [vmem:[#allocation4_spill] sm:$0xff] }
 0x427   :  { %2728 = vmatpush1.msra.mxu1 %v3534_v23  ;;  %v1341_v36 = vpop.f32.mrf.mxu0  ;;  %2653 = vmatprep.mubr.msk.f32.mxu1 %vm947_vm14, %v945_v19  ;;  %v4410_v19 = vld [vmem:[#allocation3_spill] sm:$0xff] }
 0x428   :  { %v1342_v38 = vadd.f32 %v1341_v36, %v1262_v62  ;;  %2721 = vmatprep.subr.mxu1 %v3540_v25  ;;  %v4412_v36 = vmov 1  }
 0x429   :  { %2729 = vmatpush1.msra.mxu1 %v3548_v28  ;;  %v1343_v40 = vpop.f32.mrf.mxu0 }
 0x42a   :  { %v3652_v17 = vmax.f32 %v1342_v38, 0.0  ;;  %v1344_v10 = vadd.f32 %v1343_v40, %v1262_v62  ;;  %2654 = vmatmul.mubr.msk.f32.gmra.mxu1 %vm947_vm14, %v946_v51  ;;  %2722 = vmatprep.subr.mxu1 %v3554_v29  ;;  %v4411_v62 = vld [vmem:[#allocation5_spill] sm:$0xff]  ;;  %v3713_v51 = vld [vmem:[%s4346_s5 + $0x8] sm:$0xff] }
 0x42b   :  { %2730 = vmatpush1.msra.mxu1 %v3560_v30  ;;  %1345 = vmatprep.mubr.f32.mxu1 %v4386_v55  ;;  %4413 = vst [vmem:[#allocation2_spill] sm:$0xff] %v3713_v51 }
 0x42c   :  { %v3661_v23 = vmax.f32 %v1344_v10, 0.0  ;;  %2723 = vmatprep.subr.mxu1 %v3566_v31  ;;  %1356 = vrot.lane.b32.xlu1 %v3652_v17, %s2861_s10  ;;  %v1393_v10 = vpop.permute.xlu0 %1392 }
 0x42d   :  { %2731 = vmatpush1.msra.mxu1 %v3574_v33 }
 0x42e   :  { %2462 = vmatmul.mubr.msk.f32.vlgmr.msra.gmra.mxu1 %vm101_vm0, %v1256_v21  ;;  %1360 = vrot.lane.b32.xlu0 %v3661_v23, %s2861_s10 }
 0x42f   :  { %1756 = vmatprep.mubr.f32.mxu1 %v4386_v55 }
 0x4de   :  { %v3671_v25 = vpop.f32.mrf.mxu1 }
 0x4df   :  { %v2434_v5 = vmul.f32 -1.442695, %v3671_v25 }
 0x4e0   :  { %v3673_v28 = vpop.f32.mrf.mxu1 }
 0x4e1   :  { %4404 = vst [vmem:[#allocation25_spill] sm:$0xff] %v3673_v28  ;;  %2753 = vpow2.f32 %v2434_v5 }
 0x4e2   :  { %v3675_v29 = vpop.f32.mrf.mxu1 }
 0x4e3   :  { %4405 = vst [vmem:[#allocation26_spill] sm:$0xff] %v3675_v29 }
 0x4e4   :  { %v3677_v30 = vpop.f32.mrf.mxu1 }
 0x4e5   :  { %v2435_v8 = vmul.f32 -1.442695, %v3677_v30  ;;  %v1612_v30 = vld [vmem:[%s4346_s5] sm:$0xff] }
 0x4e6   :  { %v3679_v31 = vpop.f32.mrf.mxu1 }
 0x4e7   :  { %4406 = vst [vmem:[#allocation27_spill] sm:$0xff] %v3679_v31  ;;  %2755 = vpow2.f32 %v2435_v8 }
 0x4e8   :  { %v3681_v57 = vpop.f32.mrf.mxu1 }
 0x4ea   :  { %v3683_v33 = vpop.f32.mrf.mxu1 }
 0x4eb   :  { %4407 = vst [vmem:[#allocation28_spill] sm:$0xff] %v3683_v33 }
 0x4ec   :  { %v3685_v37 = vpop.f32.mrf.mxu1 }
 0x4ee   :  { %v1347_v44 = vpop.f32.mrf.mxu1 }
 0x4ef   :  { %v1348_v3 = vadd.f32 %v1347_v44, %v1267_v0 }
 0x4f0   :  { %v1349_v2 = vpop.f32.mrf.mxu1 }
 0x4f1   :  { %v3687_v34 = vmax.f32 %v1348_v3, 0.0  ;;  %v1350_v41 = vadd.f32 %v1349_v2, %v1267_v0  ;;  %v1434_v0 = vpop.permute.xlu0 %1433 }
 0x4f3   :  { %v3689_v1 = vmax.f32 %v1350_v41, 0.0  ;;  %1358 = vrot.lane.b32.xlu1 %v3687_v34, %s2861_s10 }
 0x4f5   :  { %1362 = vrot.lane.b32.xlu0 %v3689_v1, %s2861_s10  ;;  %v3726_v3 = vpop.permute.xlu0 %1525 }
 0x4f7   :  { %1374 = vrot.lane.b32.xlu1 %v3687_v34, %s2862_s11 }
 0x4f9   :  { %1378 = vrot.lane.b32.xlu0 %v3689_v1, %s2862_s11  ;;  %v3730_v41 = vpop.permute.xlu0 %1504 }
 0x4fb   :  { %1376 = vrot.lane.b32.xlu1 %v3661_v23, %s2862_s11 }
 0x4fd   :  { %1372 = vrot.lane.b32.xlu0 %v3652_v17, %s2862_s11 }
 0x4ff   :  { %1469 = vperm.xlu1 %2743, %v3092_v49   ;;  %v3719_v49 = vld [vmem:[%s4346_s5] sm:$0xff] }
 0x500   :  { %4414 = vst [vmem:[#allocation4_spill] sm:$0xff] %v3719_v49 }
 0x501   :  { %1453 = vperm.xlu0 %2745, %v3114_v52   ;;  %v1398_v52 = vpop.permute.xlu1 %1397 }
 0x503   :  { %1464 = vperm.xlu1 %2743, %v4408_v7  }
 0x505   :  { %1448 = vperm.xlu0 %2745, %v4409_v58   ;;  %v3722_v38 = vpop.permute.xlu1 %1413  ;;  %v1546_v58 = vpop.permute.xlu0 %1545 }
 0x506   :  { %v1418_v14 = vmul.f32 %v3722_v38, %v3687_v34 }
 0x507   :  { %1484 = vperm.xlu1 %2743, %v4410_v19   ;;  %v4418_v25 = vld [vmem:[#allocation4_spill] sm:$0xff] }
 0x509   :  { %1489 = vperm.xlu0 %2745, %v4411_v62   ;;  %v1409_v40 = vpop.permute.xlu1 %1408  ;;  %v1361_v62 = vpop.permute.xlu0 %1360 }
 0x50d   :  { %2746 = vset.pattern.permute.xlu0 %v4412_v36  ;;  %v3724_v21 = vpop.permute.xlu1 %1509 }
 0x50e   :  { %1601 = vperm.xlu0 %2746, %v3713_v51   ;;  %v1416_v51 = vmul.f32 %v1409_v40, %v3652_v17 }
 0x511   :  { %v1429_v44 = vpop.permute.xlu1 %1428 }
 0x512   :  { %1597 = vperm.xlu0 %2746, %v3719_v49  }
 0x515   :  { %v3728_v2 = vpop.permute.xlu1 %1520 }
 0x516   :  { %v1529_v42 = vmul.f32 %v3728_v2, %v3661_v23 }
 0x519   :  { %v3732_v7 = vpop.permute.xlu1 %1540 }
 0x51d   :  { %v1357_v19 = vpop.permute.xlu1 %1356 }
 0x51e   :  { %v1366_v9 = vsel %vm197_vm1, %v1361_v62, %v1357_v19  ;;  %v1364_v15 = vsel %vm197_vm1, %v1357_v19, %v1361_v62 }
 0x51f   :  { %v3747_v24 = vsel %vm3156_vm2, %v1366_v9, 0.0 }
 0x520   :  { %v1400_v62 = vmul.f32 %v1393_v10, %v3747_v24 }
 0x565   :  { %v1359_v36 = vpop.permute.xlu1 %1358 }
 0x567   :  { %v1363_v63 = vpop.permute.xlu0 %1362 }
 0x568   :  { %v1367_v4 = vsel %vm197_vm1, %v1363_v63, %v1359_v36  ;;  %v1365_v32 = vsel %vm197_vm1, %v1359_v36, %v1363_v63 }
 0x569   :  { %v3740_v60 = vsel %vm3156_vm2, %v1367_v4, 0.0  ;;  %v1375_v59 = vpop.permute.xlu1 %1374  ;;  %v3755_v4 = vsel %vm3169_vm4, %v1364_v15, 0.0  ;;  %v1530_v15 = vmul.f32 %v3726_v3, %v3687_v34 }
 0x56a   :  { %v1402_v22 = vmul.f32 %v1398_v52, %v3740_v60  ;;  %v1514_v61 = vmul.f32 %v3724_v21, %v3740_v60 }
 0x56b   :  { %v1379_v6 = vpop.permute.xlu0 %1378 }
 0x56c   :  { %v1381_v16 = vsel %vm214_vm3, %v1375_v59, %v1379_v6  ;;  %v1422_v27 = vadd.f32 %v1418_v14, %v1402_v22  ;;  %v1401_v22 = vmul.f32 %v1393_v10, %v3755_v4  ;;  %v1513_v14 = vmul.f32 %v3730_v41, %v3755_v4 }
 0x56d   :  { %v3759_v19 = vsel %vm3177_vm5, %v1381_v16, 0.0  ;;  %v1377_v26 = vpop.permute.xlu1 %1376  ;;  %v1383_v49 = vsel %vm214_vm3, %v1379_v6, %v1375_v59 }
 0x56e   :  { %v1438_v9 = vmul.f32 %v1434_v0, %v3759_v19  ;;  %v1550_v16 = vmul.f32 %v1546_v58, %v3759_v19  ;;  %v1533_v35 = vadd.f32 %v1529_v42, %v1513_v14 }
 0x56f   :  { %v1373_v33 = vpop.permute.xlu0 %1372 }
 0x570   :  { %v1380_v31 = vsel %vm214_vm3, %v1373_v33, %v1377_v26  ;;  %v1382_v29 = vsel %vm214_vm3, %v1377_v26, %v1373_v33  ;;  %v1442_v54 = vadd.f32 %v1438_v9, %v1422_v27  ;;  %v1534_v26 = vadd.f32 %v1530_v15, %v1514_v61 }
 0x571   :  { %v3780_v63 = vsel %vm3177_vm5, %v1380_v31, 0.0  ;;  %v3784_v36 = vsel %vm3204_vm6, %v1382_v29, 0.0  ;;  %v1420_v27 = vadd.f32 %v1416_v51, %v1400_v62  ;;  %v1371_v33 = vsel %vm3169_vm4, %v1365_v32, 0.0 }
 0x572   :  { %v1436_v28 = vmul.f32 %v1429_v44, %v3780_v63  ;;  %1558 = vrot.lane.b32.xlu0 %v1442_v54, %s2863_s3  ;;  %v1417_v31 = vmul.f32 %v1409_v40, %v3661_v23  ;;  %v1437_v29 = vmul.f32 %v1429_v44, %v3784_v36  ;;  %v1549_v10 = vmul.f32 %v3732_v7, %v3784_v36 }
 0x573   :  { %v1554_v59 = vadd.f32 %v1550_v16, %v1534_v26  ;;  %v1387_v54 = vsel %vm3204_vm6, %v1383_v49, 0.0  ;;  %v1403_v61 = vmul.f32 %v1398_v52, %v1371_v33  ;;  %v1419_v44 = vmul.f32 %v3722_v38, %v3689_v1 }
 0x574   :  { %v1440_v6 = vadd.f32 %v1436_v28, %v1420_v27  ;;  %v1421_v32 = vadd.f32 %v1417_v31, %v1401_v22  ;;  %v1439_v51 = vmul.f32 %v1434_v0, %v1387_v54  ;;  %v1553_v62 = vadd.f32 %v1549_v10, %v1533_v35 }
 0x575   :  { %v1515_v9 = vmul.f32 %v3724_v21, %v1371_v33  ;;  %v1423_v20 = vadd.f32 %v1419_v44, %v1403_v61  ;;  %v1551_v28 = vmul.f32 %v1546_v58, %v1387_v54  ;;  %v1531_v15 = vmul.f32 %v3726_v3, %v3689_v1 }
 0x576   :  { %1578 = vrot.lane.b32.xlu0 %v1554_v59, %s2864_s24  ;;  %1556 = vrot.lane.b32.xlu1 %v1440_v6, %s2863_s3  ;;  %v1441_v40 = vadd.f32 %v1437_v29, %v1421_v32  ;;  %v1512_v0 = vmul.f32 %v3730_v41, %v3747_v24  ;;  %v1548_v38 = vmul.f32 %v3732_v7, %v3780_v63 }
 0x577   :  { %v1443_v52 = vadd.f32 %v1439_v51, %v1423_v20  ;;  %v1535_v16 = vadd.f32 %v1531_v15, %v1515_v9  ;;  %v1528_v58 = vmul.f32 %v3728_v2, %v3652_v17 }
 0x579   :  { %v1555_v14 = vadd.f32 %v1551_v28, %v1535_v16  ;;  %v1532_v3 = vadd.f32 %v1528_v58, %v1512_v0 }
 0x57a   :  { %1580 = vrot.lane.b32.xlu0 %v1553_v62, %s2864_s24  ;;  %1560 = vrot.lane.b32.xlu1 %v1441_v40, %s2863_s3  ;;  %v1470_v21 = vpop.permute.xlu1 %1469 }
 0x57b   :  { %v1474_v41 = vmul.f32 %v1470_v21, %v3687_v34  ;;  %v1475_v42 = vmul.f32 %v1470_v21, %v3689_v1  ;;  %v1552_v29 = vadd.f32 %v1548_v38, %v1532_v3 }
 0x57c   :  { %v1454_v49 = vpop.permute.xlu0 %1453 }
 0x57d   :  { %v1458_v26 = vmul.f32 %v1454_v49, %v3740_v60  ;;  %v1459_v27 = vmul.f32 %v1454_v49, %v1371_v33  ;;  %v2867_v60 = vmov 2  }
 0x57e   :  { %1562 = vrot.lane.b32.xlu1 %v1443_v52, %s2863_s3  ;;  %2748 = vset.pattern.permute.xlu0 %v2867_v60  ;;  %v1465_v33 = vpop.permute.xlu1 %1464 }
 0x57f   :  { %v1478_v10 = vadd.f32 %v1474_v41, %v1458_v26  ;;  %v1479_v7 = vadd.f32 %v1475_v42, %v1459_v27  ;;  %2747 = vset.pattern.permute.xlu1 %v2867_v60  ;;  %v1473_v9 = vmul.f32 %v1465_v33, %v3661_v23 }
 0x580   :  { %v1449_v22 = vpop.permute.xlu0 %1448 }
 0x581   :  { %v1456_v40 = vmul.f32 %v1449_v22, %v3747_v24 }
 0x582   :  { %1582 = vrot.lane.b32.xlu1 %v1555_v14, %s2864_s24  ;;  %v1485_v35 = vpop.permute.xlu1 %1484 }
 0x583   :  { %v1492_v49 = vmul.f32 %v1485_v35, %v3780_v63  ;;  %v1493_v0 = vmul.f32 %v1485_v35, %v3784_v36 }
 0x584   :  { %v1490_v31 = vpop.permute.xlu0 %1489 }
 0x585   :  { %v1494_v59 = vmul.f32 %v1490_v31, %v3759_v19  ;;  %v1495_v6 = vmul.f32 %v1490_v31, %v1387_v54  ;;  %v1472_v19 = vmul.f32 %v1465_v33, %v3652_v17  ;;  %v1457_v54 = vmul.f32 %v1449_v22, %v3755_v4 }
 0x586   :  { %1576 = vrot.lane.b32.xlu1 %v1552_v29, %s2864_s24 }
 0x587   :  { %v1498_v2 = vadd.f32 %v1494_v59, %v1478_v10  ;;  %v1499_v61 = vadd.f32 %v1495_v6, %v1479_v7  ;;  %v1476_v20 = vadd.f32 %v1472_v19, %v1456_v40  ;;  %v1477_v4 = vadd.f32 %v1473_v9, %v1457_v54 }
 0x589   :  { %v1602_v34 = vpop.permute.xlu0 %1601  ;;  %v1496_v14 = vadd.f32 %v1492_v49, %v1476_v20  ;;  %v1497_v27 = vadd.f32 %v1493_v0, %v1477_v4  ;;  %v4423_v0 = vld [vmem:[#allocation28_spill] sm:$0xff] }
 0x58d   :  { %v1598_v1 = vpop.permute.xlu0 %1597 }
 0x5e4   :  { %v1559_v51 = vpop.permute.xlu0 %1558 }
 0x5e8   :  { %v1557_v32 = vpop.permute.xlu1 %1556  ;;  %v1579_v52 = vpop.permute.xlu0 %1578 }
 0x5ec   :  { %v1561_v62 = vpop.permute.xlu1 %1560  ;;  %v1581_v41 = vpop.permute.xlu0 %1580 }
 0x5ed   :  { %v1566_v15 = vsel %vm407_vm7, %v1561_v62, %v1557_v32  ;;  %v1564_v58 = vsel %vm407_vm7, %v1557_v32, %v1561_v62 }
 0x5ee   :  { %v1568_v38 = vsel %vm63_vm8, %v1566_v15, 0.0  ;;  %v1573_v10 = vadd.f32 %v1564_v58, %v1497_v27 }
 0x5ef   :  { %v1572_v42 = vadd.f32 %v1568_v38, %v1496_v14 }
 0x5f0   :  { %v1563_v44 = vpop.permute.xlu1 %1562 }
 0x5f1   :  { %v1567_v28 = vsel %vm407_vm7, %v1563_v44, %v1559_v51  ;;  %v1565_v24 = vsel %vm407_vm7, %v1559_v51, %v1563_v44 }
 0x5f2   :  { %v1570_v17 = vsel %vm63_vm8, %v1567_v28, 0.0  ;;  %v1575_v21 = vadd.f32 %v1565_v24, %v1499_v61  ;;  %v4421_v28 = vld [vmem:[#allocation27_spill] sm:$0xff] }
 0x5f3   :  { %v1574_v23 = vadd.f32 %v1570_v17, %v1498_v2  ;;  %v2438_v49 = vmul.f32 -1.442695, %v4421_v28 }
 0x5f4   :  { %v1583_v16 = vpop.permute.xlu1 %1582 }
 0x5f5   :  { %v1585_v63 = vsel %vm428_vm9, %v1579_v52, %v1583_v16  ;;  %v1587_v22 = vsel %vm428_vm9, %v1583_v16, %v1579_v52  ;;  %v4422_v52 = vld [vmem:[#allocation2_spill] sm:$0xff] }
 0x5f6   :  { %v1591_v26 = vsel %vm66_vm10, %v1587_v22, 0.0  ;;  %v1594_v36 = vadd.f32 %v1585_v63, %v1574_v23  ;;  %v2440_v23 = vmul.f32 -1.442695, %v4423_v0 }
 0x5f7   :  { %v1595_v3 = vadd.f32 %v1591_v26, %v1575_v21  ;;  %v4424_v21 = vmov 0  }
 0x5f8   :  { %v1606_v31 = vadd.f32 %v1602_v34, %v1594_v36  ;;  %v1577_v29 = vpop.permute.xlu1 %1576 }
 0x5f9   :  { %v1584_v7 = vsel %vm428_vm9, %v1577_v29, %v1581_v41  ;;  %v1586_v59 = vsel %vm428_vm9, %v1581_v41, %v1577_v29  ;;  %v1607_v6 = vadd.f32 %v1602_v34, %v1595_v3  ;;  %v4420_v34 = vld [vmem:[#allocation26_spill] sm:$0xff] }
 0x5fa   :  { %v1610_v2 = vmax.f32 %v1606_v31, 0.0  ;;  %v1589_v61 = vsel %vm66_vm10, %v1586_v59, 0.0  ;;  %v1592_v33 = vadd.f32 %v1584_v7, %v1572_v42 }
 0x5fb   :  { %v1593_v35 = vadd.f32 %v1589_v61, %v1573_v10  ;;  %v1611_v32 = vmax.f32 %v1607_v6, 0.0  ;;  %v2820_v6 = vld [vmem:[%s4349_s4 + $0x8] sm:$0xff] }
 0x5fc   :  { %v1604_v51 = vadd.f32 %v1598_v1, %v1592_v33 }
 0x5fd   :  { %1720 = vmatprep.subr.mxu1 %v1611_v32  ;;  %v1808_v62 = vadd.f32 %v1611_v32, %v1610_v2  ;;  %v1605_v40 = vadd.f32 %v1598_v1, %v1593_v35  ;;  %v2436_v1 = vmul.f32 -1.442695, %v4420_v34  ;;  %v2822_v35 = vld [vmem:[%s4349_s4 + $0x18] sm:$0xff]  ;;  %v2823_v32 = vld [vmem:[%s4349_s4 + $0x20] sm:$0xff] }
 0x5fe   :  { %v1608_v19 = vmax.f32 %v1604_v51, 0.0  ;;  %1721 = vmatpush1.msra.mxu1 %v1610_v2  ;;  %v2821_v2 = vld [vmem:[%s4349_s4 + $0x10] sm:$0xff] }
 0x5ff   :  { %1809 = vadd.xlane.f32.xlu1 %v1808_v62  ;;  %v1609_v54 = vmax.f32 %v1605_v40, 0.0  ;;  %v2824_v40 = vld [vmem:[%s4349_s4 + $0x28] sm:$0xff] }
 0x601   :  { %1722 = vmatprep.subr.mxu1 %v1609_v54  ;;  %v1805_v44 = vadd.f32 %v1609_v54, %v1608_v19 }
 0x602   :  { %1723 = vmatpush1.msra.mxu1 %v1608_v19  ;;  %v2825_v19 = vld [vmem:[%s4349_s4 + $0x30] sm:$0xff] }
 0x603   :  { %1806 = vadd.xlane.f32.xlu0 %v1805_v44  ;;  %2479 = vmatmul.mubr.msk.f32.vlgmr.msra.gmra.mxu1 %vm513_vm11, %v3310_v12  ;;  %v2437_v12 = vmul.f32 -1.442695, %v3681_v57 }
 0x604   :  { %1762 = vmatprep.mubr.f32.mxu1 %v4386_v55  ;;  %2683 = vmatprep.subr.mxu1 %v4386_v55 }
 0x605   :  { %2757 = vpow2.f32 %v2437_v12 }
 0x607   :  { %2480 = vmatmul.mubr.msk.f32.gmra.mxu1 %vm513_vm11, %v3327_v39  ;;  %v3887_v39 = vld [vmem:[%s4346_s5 + $0x8] sm:$0xff] }
 0x608   :  { %1768 = vmatprep.mubr.f32.mxu1 %v4386_v55 }
 0x60b   :  { %2481 = vmatmul.mubr.msk.f32.gmra.mxu1 %vm513_vm11, %v3347_v56  ;;  %v2439_v56 = vmul.f32 -1.442695, %v3685_v37 }
 0x60c   :  { %1774 = vmatprep.mubr.f32.mxu1 %v4386_v55 }
 0x60d   :  { %2759 = vpow2.f32 %v2439_v56 }
 0x60f   :  { %2482 = vmatmul.mubr.msk.f32.gmra.mxu1 %vm513_vm11, %v3364_v48  ;;  %v2754_v48 = vpop.eup %2753 }
 0x610   :  { %1825 = vrot.lane.b32.xlu1 %v3303_v43, %s2865_s27  ;;  %1780 = vmatprep.mubr.f32.mxu1 %v4386_v55  ;;  %v1106_v57 = vadd.f32 1.0, %v2754_v48  ;;  %v2756_v37 = vpop.eup %2755 }
 0x611   :  { %v1107_v9 = vadd.f32 1.0, %v2756_v37 }
 0x612   :  { %v2758_v20 = vpop.eup %2757 }
 0x613   :  { %2483 = vmatmul.mubr.msk.f32.gmra.mxu1 %vm513_vm11, %v3380_v18  ;;  %v4417_v18 = vld [vmem:[#allocation25_spill] sm:$0xff]  ;;  %v1109_v15 = vadd.f32 1.0, %v2758_v20  ;;  %v4428_v20 = vld [vmem:[#allocation14_spill] sm:$0xff] }
 0x614   :  { %1823 = vrot.lane.b32.xlu1 %v3315_v53, %s2865_s27  ;;  %1786 = vmatprep.mubr.f32.mxu1 %v4386_v55 }
 0x617   :  { %2484 = vmatmul.mubr.msk.f32.gmra.mxu1 %vm513_vm11, %v3391_v47  ;;  %v2433_v47 = vmul.f32 -1.442695, %v4417_v18 }
 0x618   :  { %1819 = vrot.lane.b32.xlu1 %v3332_v50, %s2865_s27  ;;  %1792 = vmatprep.mubr.f32.mxu1 %v4386_v55 }
 0x619   :  { %1827 = vrot.lane.b32.xlu0 %v3339_v45, %s2865_s27  ;;  %2761 = vpow2.f32 %v2433_v47  ;;  %v4425_v47 = vld [vmem:[#allocation11_spill] sm:$0xff] }
 0x61a   :  { %2763 = vrcp.f32 %v1106_v57  ;;  %v2760_v24 = vpop.eup %2759 }
 0x61b   :  { %2485 = vmatmul.mubr.msk.f32.gmra.mxu1 %vm513_vm11, %v3402_v11  ;;  %v4419_v11 = vld [vmem:[#allocation8_spill] sm:$0xff]  ;;  %2765 = vpow2.f32 %v2436_v1  ;;  %v1111_v17 = vadd.f32 1.0, %v2760_v24  ;;  %v4427_v1 = vld [vmem:[#allocation13_spill] sm:$0xff] }
 0x61c   :  { %1815 = vrot.lane.b32.xlu1 %v3887_v39, %s2865_s27  ;;  %1798 = vmatprep.mubr.f32.mxu1 %v4386_v55  ;;  %2767 = vrcp.f32 %v1107_v9 }
 0x61d   :  { %1821 = vrot.lane.b32.xlu0 %v3356_v46, %s2865_s27  ;;  %2769 = vpow2.f32 %v2438_v49  ;;  %v2826_v49 = vld [vmem:[%s4345_s0 + $0x10] sm:$0xff] }
 0x61e   :  { %2771 = vrcp.f32 %v1109_v15  ;;  %v2827_v15 = vld [vmem:[%s4345_s0 + $0x18] sm:$0xff] }
 0x61f   :  { %2486 = vmatmul.mubr.msk.f32.gmra.mxu1 %vm513_vm11, %v3412_v13  ;;  %2773 = vrcp.f32 %v1111_v17 }
 0x620   :  { %475 = vperm.xlu1 %2747, %v4418_v25   ;;  %2699 = vmatprep.mubr.msk.f32.mxu1 %vm2866_vm12, %v4386_v55  ;;  %2775 = vpow2.f32 %v2440_v23 }
 0x621   :  { %1817 = vrot.lane.b32.xlu0 %v4419_v11, %s2865_s27 }
 0x624   :  { %485 = vperm.xlu1 %2747, %v4419_v11  }
 0x625   :  { %1813 = vrot.lane.b32.xlu0 %v1612_v30, %s2865_s27 }
 0x626   :  { %v2762_v4 = vpop.eup %2761 }
 0x627   :  { %v2764_v16 = vpop.eup %2763  ;;  %v1105_v38 = vadd.f32 1.0, %v2762_v4 }
 0x628   :  { %490 = vperm.xlu1 %2747, %v3332_v50   ;;  %v2766_v63 = vpop.eup %2765 }
 0x629   :  { %480 = vperm.xlu0 %2748, %v4422_v52   ;;  %v2768_v22 = vpop.eup %2767  ;;  %2777 = vrcp.f32 %v1105_v38  ;;  %v1108_v14 = vadd.f32 1.0, %v2766_v63 }
 0x62a   :  { %v2770_v58 = vpop.eup %2769 }
 0x62b   :  { %v2772_v26 = vpop.eup %2771  ;;  %2779 = vrcp.f32 %v1108_v14  ;;  %v1110_v36 = vadd.f32 1.0, %v2770_v58  ;;  %v2828_v58 = vld [vmem:[%s4345_s0 + $0x20] sm:$0xff] }
 0x62c   :  { %500 = vperm.xlu1 %2747, %v3315_v53  }
 0x62d   :  { %495 = vperm.xlu0 %2748, %v3356_v46   ;;  %2781 = vrcp.f32 %v1110_v36  ;;  %v2829_v36 = vld [vmem:[%s4345_s0 + $0x28] sm:$0xff] }
 0x630   :  { %510 = vperm.xlu1 %2747, %v3339_v45  }
 0x631   :  { %505 = vperm.xlu0 %2748, %v3303_v43   ;;  %v2774_v43 = vpop.eup %2773 }
 0x632   :  { %v2776_v27 = vpop.eup %2775 }
 0x633   :  { %v1112_v41 = vadd.f32 1.0, %v2776_v27 }
 0x634   :  { %2749 = vset.pattern.permute.xlu1 %v4424_v21 }
 0x635   :  { %1136 = vperm.xlu1 %2749, %v2764_v16   ;;  %1630 = vperm.xlu0 %2748, %v1612_v30   ;;  %2783 = vrcp.f32 %v1112_v41 }
 0x636   :  { %v2778_v3 = vpop.eup %2777 }
 0x639   :  { %1141 = vperm.xlu1 %2749, %v2768_v22   ;;  %1645 = vperm.xlu0 %2748, %v3332_v50   ;;  %v2780_v50 = vpop.eup %2779  ;;  %v4430_v22 = vld [vmem:[#allocation18_spill] sm:$0xff] }
 0x63d   :  { %1151 = vperm.xlu1 %2749, %v2772_v26   ;;  %1655 = vperm.xlu0 %2748, %v3315_v53   ;;  %v2782_v53 = vpop.eup %2781 }
 0x641   :  { %1161 = vperm.xlu1 %2749, %v2774_v43   ;;  %1665 = vperm.xlu0 %2748, %v3339_v45   ;;  %v2819_v45 = vld [vmem:[%s4346_s5 + $0x30] sm:$0xff] }
 0x645   :  { %2750 = vset.pattern.permute.xlu1 %v2867_v60  ;;  %2751 = vset.pattern.permute.xlu0 %v4424_v21  ;;  %v2784_v60 = vpop.eup %2783 }
 0x646   :  { %1635 = vperm.xlu1 %2750, %v3887_v39   ;;  %1131 = vperm.xlu0 %2751, %v2778_v3  }
 0x64a   :  { %1640 = vperm.xlu1 %2750, %v4419_v11   ;;  %1146 = vperm.xlu0 %2751, %v2780_v50   ;;  %v4426_v11 = vld [vmem:[#allocation12_spill] sm:$0xff] }
 0x64e   :  { %1650 = vperm.xlu1 %2750, %v3356_v46   ;;  %1156 = vperm.xlu0 %2751, %v2782_v53  }
 0x652   :  { %1660 = vperm.xlu1 %2750, %v2819_v45  }
 0x656   :  { %2752 = vset.pattern.permute.xlu1 %v4424_v21  ;;  %v4429_v21 = vld [vmem:[#allocation17_spill] sm:$0xff] }
 0x657   :  { %1166 = vperm.xlu1 %2752, %v2784_v60   ;;  %v4431_v60 = vld [vmem:[#allocation21_spill] sm:$0xff] }
 0x688   :  { %v1810_v42 = vpop.xlane.xlu1 %1809 }
 0x689   :  { %v1812_v31 = vmul.f32 0.00390625, %v1810_v42 }
 0x68b   :  { %2656 = vmatprep.subr.mxu0 %v1812_v31 }
 0x68c   :  { %v1807_v29 = vpop.xlane.xlu0 %1806  ;;  %2657 = vmatpush3.msra.mxu0 %v1812_v31  ;;  %v3932_v10 = vpop.permute.xlu1 %1825  ;;  %v4432_v31 = vld [vmem:[#allocation22_spill] sm:$0xff] }
 0x68d   :  { %v1811_v7 = vmul.f32 0.00390625, %v1807_v29 }
 0x68f   :  { %2658 = vmatprep.subr.mxu0 %v1811_v7 }
 0x690   :  { %2659 = vmatpush3.msra.mxu0 %v1811_v7  ;;  %v3934_v46 = vpop.permute.xlu1 %1823  ;;  %v3936_v59 = vpop.permute.xlu0 %1827  ;;  %v2830_v7 = vld [vmem:[%s4345_s0 + $0x40] sm:$0xff] }
 0x691   :  { %2661 = vmatmul.mubr.msk.f32.vlgmr.msra.gmra.mxu0 %vm513_vm11, %v2820_v6  ;;  %2672 = vmatprep.subr.mxu0 %v4386_v55 }
 0x692   :  { %2663 = vmatprep.mubr.msk.f32.mxu0 %vm513_vm11, %v2821_v2  ;;  %v2831_v2 = vld [vmem:[%s4345_s0 + $0x48] sm:$0xff] }
 0x694   :  { %v3947_v61 = vpop.permute.xlu1 %1819  ;;  %v3949_v33 = vpop.permute.xlu0 %1821 }
 0x695   :  { %2664 = vmatmul.mubr.msk.f32.gmra.mxu0 %vm513_vm11, %v2822_v35 }
 0x696   :  { %2666 = vmatprep.mubr.msk.f32.mxu0 %vm513_vm11, %v2823_v32 }
 0x698   :  { %v3959_v51 = vpop.permute.xlu1 %1815  ;;  %v3961_v62 = vpop.permute.xlu0 %1817 }
 0x699   :  { %2667 = vmatmul.mubr.msk.f32.gmra.mxu0 %vm513_vm11, %v2824_v40 }
 0x69a   :  { %2669 = vmatprep.mubr.msk.f32.mxu0 %vm513_vm11, %v2825_v19 }
 0x69c   :  { %v3971_v54 = vpop.permute.xlu1 %475  ;;  %v3975_v44 = vpop.permute.xlu0 %1813 }
 0x69d   :  { %2670 = vmatmul.mubr.msk.f32.gmra.mxu0 %vm513_vm11, %v3412_v13 }
 0x69e   :  { %2680 = vmatprep.mubr.msk.f32.mxu0 %vm2866_vm12, %v4386_v55 }
 0x6a0   :  { %v486_v5 = vpop.permute.xlu1 %485 }
 0x6a1   :  { %v617_v9 = vadd.f32 %v4427_v1, %v486_v5  ;;  %v619_v28 = vadd.f32 %v4428_v20, %v486_v5 }
 0x6a4   :  { %v481_v8 = vpop.permute.xlu0 %480  ;;  %v3979_v12 = vpop.permute.xlu1 %490 }
 0x6a5   :  { %v611_v25 = vadd.f32 %v4425_v47, %v481_v8  ;;  %v613_v30 = vadd.f32 %v4426_v11, %v481_v8 }
 0x6a8   :  { %v496_v39 = vpop.permute.xlu0 %495  ;;  %v3981_v56 = vpop.permute.xlu1 %500 }
 0x6a9   :  { %v629_v63 = vadd.f32 %v4429_v21, %v496_v39  ;;  %v631_v14 = vadd.f32 %v4430_v22, %v496_v39 }
 0x6ac   :  { %v506_v48 = vpop.permute.xlu0 %505  ;;  %v3983_v18 = vpop.permute.xlu1 %510 }
 0x6ad   :  { %v641_v42 = vadd.f32 %v4431_v60, %v506_v48  ;;  %v643_v29 = vadd.f32 %v4432_v31, %v506_v48  ;;  %v2832_v48 = vld [vmem:[%s4345_s0 + $0x60] sm:$0xff] }
 0x6b0   :  { %v1137_v13 = vpop.permute.xlu1 %1136  ;;  %v3987_v57 = vpop.permute.xlu0 %1630 }
 0x6b1   :  { %v1171_v37 = vmul.f32 %v1137_v13, %v611_v25  ;;  %v1172_v34 = vmul.f32 %v1137_v13, %v613_v30  ;;  %v2833_v25 = vld [vmem:[%s4345_s0 + $0x68] sm:$0xff]  ;;  %v4433_v30 = vld [vmem:[#allocation9_spill] sm:$0xff] }
 0x6b2   :  { %v605_v13 = vadd.f32 %v4433_v30, %v3971_v54 }
 0x6b3   :  { %v1187_v52 = vadd.f32 %v2826_v49, %v1171_v37  ;;  %v1188_v24 = vadd.f32 %v2827_v15, %v1172_v34  ;;  %v4434_v37 = vld [vmem:[#allocation10_spill] sm:$0xff]  ;;  %v4435_v15 = vld [vmem:[#allocation15_spill] sm:$0xff] }
 0x6b4   :  { %v1142_v17 = vpop.permute.xlu1 %1141  ;;  %v3997_v4 = vpop.permute.xlu0 %1645  ;;  %v607_v34 = vadd.f32 %v4434_v37, %v3971_v54  ;;  %v4436_v54 = vld [vmem:[#allocation16_spill] sm:$0xff] }
 0x6b5   :  { %v1203_v0 = vmax.f32 %v1187_v52, 0.0  ;;  %v1204_v23 = vmax.f32 %v1188_v24, 0.0  ;;  %v1173_v16 = vmul.f32 %v1142_v17, %v617_v9  ;;  %v1174_v38 = vmul.f32 %v1142_v17, %v619_v28  ;;  %v2840_v37 = vld [vmem:[%s4345_s0 + $0x70] sm:$0xff] }
 0x6b6   :  { %v623_v24 = vadd.f32 %v4435_v15, %v3979_v12  ;;  %v625_v17 = vadd.f32 %v4436_v54, %v3979_v12  ;;  %v2458_v15 = vld [vmem:[%s4350_s1 + $0x28] sm:$0xff]  ;;  %v1943_v54 = vld [vmem:[%s4351_s7] sm:$0xf] }
 0x6b7   :  { %1219 = vst [vmem:[%s4354_s9 + $0x10] sm:$0xff] %v1203_v0  ;;  %1220 = vst [vmem:[%s4354_s9 + $0x18] sm:$0xff] %v1204_v23  ;;  %v1189_v26 = vadd.f32 %v2828_v58, %v1173_v16  ;;  %v1190_v43 = vadd.f32 %v2829_v36, %v1174_v38  ;;  %v2834_v0 = vld [vmem:[%s4345_s0] sm:$0xff]  ;;  %v2835_v16 = vld [vmem:[%s4345_s0 + $0x8] sm:$0xff] }
 0x6b8   :  { %v1152_v27 = vpop.permute.xlu1 %1151  ;;  %v4013_v3 = vpop.permute.xlu0 %1655  ;;  %v4437_v36 = vld [vmem:[#allocation19_spill] sm:$0xff] }
 0x6b9   :  { %v1205_v41 = vmax.f32 %v1189_v26, 0.0  ;;  %v1206_v50 = vmax.f32 %v1190_v43, 0.0  ;;  %v1177_v53 = vmul.f32 %v1152_v27, %v629_v63  ;;  %v1178_v45 = vmul.f32 %v1152_v27, %v631_v14  ;;  %v4438_v43 = vld [vmem:[#allocation20_spill] sm:$0xff] }
 0x6ba   :  { %v635_v12 = vadd.f32 %v4437_v36, %v3981_v56  ;;  %v637_v27 = vadd.f32 %v4438_v43, %v3981_v56 }
 0x6bb   :  { %1221 = vst [vmem:[%s4354_s9 + $0x20] sm:$0xff] %v1205_v41  ;;  %1222 = vst [vmem:[%s4354_s9 + $0x28] sm:$0xff] %v1206_v50  ;;  %v1193_v6 = vadd.f32 %v2830_v7, %v1177_v53  ;;  %v1194_v35 = vadd.f32 %v2831_v2, %v1178_v45  ;;  %v2836_v41 = vld [vmem:[%s4345_s0 + $0x30] sm:$0xff]  ;;  %v2837_v53 = vld [vmem:[%s4345_s0 + $0x38] sm:$0xff] }
 0x6bc   :  { %v1162_v32 = vpop.permute.xlu1 %1161  ;;  %v4029_v40 = vpop.permute.xlu0 %1665 }
 0x6bd   :  { %v1209_v19 = vmax.f32 %v1193_v6, 0.0  ;;  %v1210_v5 = vmax.f32 %v1194_v35, 0.0  ;;  %v1181_v8 = vmul.f32 %v1162_v32, %v641_v42  ;;  %v1182_v39 = vmul.f32 %v1162_v32, %v643_v29  ;;  %v2838_v6 = vld [vmem:[%s4345_s0 + $0x50] sm:$0xff]  ;;  %v2839_v35 = vld [vmem:[%s4345_s0 + $0x58] sm:$0xff] }
 0x6bf   :  { %1225 = vst [vmem:[%s4354_s9 + $0x40] sm:$0xff] %v1209_v19  ;;  %1226 = vst [vmem:[%s4354_s9 + $0x48] sm:$0xff] %v1210_v5  ;;  %v1197_v47 = vadd.f32 %v2832_v48, %v1181_v8  ;;  %v1198_v11 = vadd.f32 %v2833_v25, %v1182_v39  ;;  %v4439_v39 = vld [vmem:[#allocation23_spill] sm:$0xff] }
 0x6c0   :  { %v647_v48 = vadd.f32 %v4439_v39, %v3983_v18 }
 0x6c1   :  { %v1213_v1 = vmax.f32 %v1197_v47, 0.0  ;;  %v1214_v9 = vmax.f32 %v1198_v11, 0.0  ;;  %v1132_v20 = vpop.permute.xlu0 %1131  ;;  %v4047_v28 = vpop.permute.xlu1 %1635  ;;  %v4440_v47 = vld [vmem:[#allocation24_spill] sm:$0xff] }
 0x6c2   :  { %v1169_v49 = vmul.f32 %v1132_v20, %v605_v13  ;;  %v1170_v52 = vmul.f32 %v1132_v20, %v607_v34  ;;  %v649_v25 = vadd.f32 %v4440_v47, %v3983_v18  ;;  %v2460_v18 = vld [vmem:[%s4350_s1 + $0x38] sm:$0xff] }
 0x6c3   :  { %1229 = vst [vmem:[%s4354_s9 + $0x60] sm:$0xff] %v1213_v1  ;;  %1230 = vst [vmem:[%s4354_s9 + $0x68] sm:$0xff] %v1214_v9  ;;  %v2841_v1 = vld [vmem:[%s4345_s0 + $0x78] sm:$0xff]  ;;  %2673 = vmatpush3.msra.mxu0 %v2460_v18 }
 0x6c4   :  { %v1185_v23 = vadd.f32 %v2834_v0, %v1169_v49  ;;  %v1186_v38 = vadd.f32 %v2835_v16, %v1170_v52  ;;  %2674 = vmatprep.subr.mxu0 %v4386_v55  ;;  %v2459_v52 = vld [vmem:[%s4350_s1 + $0x30] sm:$0xff]  ;;  %v2098_v18 = vld [vmem:[%s4353_s8 + $0x38] sm:$0xff] }
 0x6c5   :  { %v1147_v21 = vpop.permute.xlu0 %1146  ;;  %v4065_v63 = vpop.permute.xlu1 %1640  ;;  %2675 = vmatpush3.msra.mxu0 %v2459_v52 }
 0x6c6   :  { %v1201_v22 = vmax.f32 %v1185_v23, 0.0  ;;  %v1202_v14 = vmax.f32 %v1186_v38, 0.0  ;;  %v1175_v58 = vmul.f32 %v1147_v21, %v623_v24  ;;  %v1176_v26 = vmul.f32 %v1147_v21, %v625_v17  ;;  %2676 = vmatprep.subr.mxu0 %v4386_v55  ;;  %v2457_v24 = vld [vmem:[%s4350_s1 + $0x20] sm:$0xff]  ;;  %v1758_v17 = vpop.f32.mrf.mxu1 }
 0x6c7   :  { %2677 = vmatpush3.msra.mxu0 %v2458_v15  ;;  %v4137_v0 = vadd.f32 %v1758_v17, %v3987_v57 }
 0x6c8   :  { %1217 = vst [vmem:[%s4354_s9] sm:$0xff] %v1201_v22  ;;  %1218 = vst [vmem:[%s4354_s9 + $0x8] sm:$0xff] %v1202_v14  ;;  %v1191_v50 = vadd.f32 %v2836_v41, %v1175_v58  ;;  %v1192_v45 = vadd.f32 %v2837_v53, %v1176_v26  ;;  %2678 = vmatprep.subr.mxu0 %v4386_v55  ;;  %v1760_v23 = vpop.f32.mrf.mxu1 }
 0x6c9   :  { %v1157_v60 = vpop.permute.xlu0 %1156  ;;  %v1651_v56 = vpop.permute.xlu1 %1650  ;;  %2679 = vmatpush3.msra.mxu0 %v2457_v24  ;;  %v4140_v16 = vadd.f32 %v1760_v23, %v3987_v57 }
 0x6ca   :  { %v1207_v42 = vmax.f32 %v1191_v50, 0.0  ;;  %v1208_v31 = vmax.f32 %v1192_v45, 0.0  ;;  %v1179_v29 = vmul.f32 %v1157_v60, %v635_v12  ;;  %v1180_v7 = vmul.f32 %v1157_v60, %v637_v27  ;;  %2681 = vmatmul.mubr.msk.f32.vlgmr.msra.gmra.mxu0 %vm791_vm13, %v1943_v54  ;;  %v1764_v38 = vpop.f32.mrf.mxu1 }
 0x6cb   :  { %v4143_v21 = vadd.f32 %v1764_v38, %v4047_v28 }
 0x6cc   :  { %1223 = vst [vmem:[%s4354_s9 + $0x30] sm:$0xff] %v1207_v42  ;;  %1224 = vst [vmem:[%s4354_s9 + $0x38] sm:$0xff] %v1208_v31  ;;  %v1195_v2 = vadd.f32 %v2838_v6, %v1179_v29  ;;  %v1196_v32 = vadd.f32 %v2839_v35, %v1180_v7  ;;  %v1766_v22 = vpop.f32.mrf.mxu1 }
 0x6cd   :  { %v1661_v19 = vpop.permute.xlu1 %1660  ;;  %v4146_v14 = vadd.f32 %v1766_v22, %v4047_v28 }
 0x6ce   :  { %v1211_v5 = vmax.f32 %v1195_v2, 0.0  ;;  %v1212_v8 = vmax.f32 %v1196_v32, 0.0  ;;  %v1770_v58 = vpop.f32.mrf.mxu1 }
 0x6cf   :  { %v4149_v26 = vadd.f32 %v1770_v58, %v4065_v63 }
 0x6d0   :  { %1227 = vst [vmem:[%s4354_s9 + $0x50] sm:$0xff] %v1211_v5  ;;  %1228 = vst [vmem:[%s4354_s9 + $0x58] sm:$0xff] %v1212_v8  ;;  %v1772_v36 = vpop.f32.mrf.mxu1 }
 0x6d1   :  { %v4152_v12 = vadd.f32 %v1772_v36, %v4065_v63 }
 0x6d2   :  { %v1167_v11 = vpop.permute.xlu1 %1166  ;;  %v4154_v43 = vpop.f32.mrf.mxu1 }
 0x6d3   :  { %v1183_v30 = vmul.f32 %v1167_v11, %v647_v48  ;;  %v1184_v13 = vmul.f32 %v1167_v11, %v649_v25 }
 0x6d4   :  { %v4156_v57 = vpop.f32.mrf.mxu1 }
 0x6d5   :  { %v1199_v34 = vadd.f32 %v2840_v37, %v1183_v30  ;;  %v1200_v9 = vadd.f32 %v2841_v1, %v1184_v13  ;;  %v2094_v1 = vld [vmem:[%s4353_s8 + $0x18] sm:$0xff] }
 0x6d6   :  { %v1782_v27 = vpop.f32.mrf.mxu1 }
 0x6d7   :  { %v1215_v20 = vmax.f32 %v1199_v34, 0.0  ;;  %v1216_v49 = vmax.f32 %v1200_v9, 0.0  ;;  %v4158_v41 = vadd.f32 %v1782_v27, %v1651_v56  ;;  %v2093_v34 = vld [vmem:[%s4353_s8 + $0x10] sm:$0xff]  ;;  %v2095_v9 = vld [vmem:[%s4353_s8 + $0x20] sm:$0xff] }
 0x6d8   :  { %v1784_v50 = vpop.f32.mrf.mxu1 }
 0x6d9   :  { %1231 = vst [vmem:[%s4354_s9 + $0x70] sm:$0xff] %v1215_v20  ;;  %1232 = vst [vmem:[%s4354_s9 + $0x78] sm:$0xff] %v1216_v49  ;;  %v4160_v53 = vadd.f32 %v1784_v50, %v1651_v56  ;;  %v2096_v20 = vld [vmem:[%s4353_s8 + $0x28] sm:$0xff]  ;;  %v2097_v49 = vld [vmem:[%s4353_s8 + $0x30] sm:$0xff] }
 0x6da   :  { %v4162_v28 = vpop.f32.mrf.mxu1 }
 0x6dc   :  { %v4164_v45 = vpop.f32.mrf.mxu1 }
 0x6de   :  { %v1794_v60 = vpop.f32.mrf.mxu1 }
 0x6df   :  { %v4166_v42 = vadd.f32 %v1794_v60, %v1661_v19 }
 0x6e0   :  { %v1796_v31 = vpop.f32.mrf.mxu1 }
 0x6e1   :  { %v4168_v63 = vadd.f32 %v1796_v31, %v1661_v19 }
 0x6e2   :  { %v4193_v25 = vpop.f32.mrf.mxu1 }
 0x751   :  { %v2662_v29 = vpop.f32.mrf.mxu0 }
 0x753   :  { %v1903_v7 = vpop.f32.mrf.mxu0 }
 0x755   :  { %v2665_v6 = vpop.f32.mrf.mxu0 }
 0x756   :  { %v1919_v47 = vadd.f32 %v2665_v6, %v3947_v61  ;;  %v1942_v61 = vld [vmem:[%s4352_s6] sm:$0xf] }
 0x757   :  { %v1913_v2 = vpop.f32.mrf.mxu0 }
 0x759   :  { %v2668_v35 = vpop.f32.mrf.mxu0 }
 0x75a   :  { %v1929_v48 = vadd.f32 %v2668_v35, %v3934_v46  ;;  %v1909_v46 = vadd.f32 %v2662_v29, %v3959_v51  ;;  %v2091_v51 = vld [vmem:[%s4353_s8] sm:$0xff] }
 0x75b   :  { %v1923_v32 = vpop.f32.mrf.mxu0  ;;  %2704 = vmatprep.mubr.msk.f32.mxu0 %vm947_vm14, %v2091_v51 }
 0x75c   :  { %v1924_v19 = vadd.f32 %v1923_v32, %v3949_v33 }
 0x75d   :  { %v2671_v5 = vpop.f32.mrf.mxu0 }
 0x75e   :  { %v1939_v56 = vadd.f32 %v2671_v5, %v3936_v59  ;;  %v1904_v59 = vadd.f32 %v1903_v7, %v3975_v44  ;;  %v4195_v44 = vpop.f32.mrf.mxu1 }
 0x75f   :  { %v1933_v8 = vpop.f32.mrf.mxu0 }
 0x760   :  { %v1934_v39 = vadd.f32 %v1933_v8, %v3932_v10  ;;  %2684 = vmatpush3.msra.mxu1 %v1939_v56  ;;  %v1914_v10 = vadd.f32 %v1913_v2, %v3961_v62 }
 0x761   :  { %2685 = vmatprep.subr.mxu1 %v4386_v55 }
 0x762   :  { %2686 = vmatpush3.msra.mxu1 %v1934_v39 }
 0x763   :  { %2687 = vmatprep.subr.mxu1 %v4386_v55 }
 0x764   :  { %2688 = vmatpush3.msra.mxu1 %v1929_v48 }
 0x765   :  { %2689 = vmatprep.subr.mxu1 %v4386_v55 }
 0x766   :  { %2690 = vmatpush3.msra.mxu1 %v1924_v19 }
 0x767   :  { %2691 = vmatprep.subr.mxu1 %v4386_v55 }
 0x768   :  { %2692 = vmatpush3.msra.mxu1 %v1919_v47 }
 0x769   :  { %2693 = vmatprep.subr.mxu1 %v4386_v55 }
 0x76a   :  { %2694 = vmatpush3.msra.mxu1 %v1914_v10 }
 0x76b   :  { %2695 = vmatprep.subr.mxu1 %v4386_v55 }
 0x76c   :  { %2696 = vmatpush3.msra.mxu1 %v1909_v46 }
 0x76d   :  { %2697 = vmatprep.subr.mxu1 %v4386_v55  ;;  %v2092_v55 = vld [vmem:[%s4353_s8 + $0x8] sm:$0xff] }
 0x76e   :  { %2698 = vmatpush3.msra.mxu1 %v1904_v59 }
 0x76f   :  { %2700 = vmatmul.mubr.msk.f32.vlgmr.msra.gmra.mxu1 %vm101_vm0, %v1942_v61 }
 0x78a   :  { %v2013_v33 = vpop.f32.mrf.mxu0 }
 0x78c   :  { %v2682_v62 = vpop.f32.mrf.mxu0 }
 0x82f   :  { %v2086_v11 = vpop.f32.mrf.mxu1 }
 0x830   :  { %v2087_v30 = vadd.f32 %v2086_v11, %v2013_v33 }
 0x831   :  { %v2701_v13 = vpop.f32.mrf.mxu1 }
 0x832   :  { %v2090_v37 = vmax.f32 %v2087_v30, 0.0 }
 0x834   :  { %2702 = vmatprep.subr.msk.mxu0 %vm972_vm15, %v2090_v37 }
 0x835   :  { %2703 = vmatpush3.msk.msra.mxu0 %vm972_vm15, %v2090_v37 }
 0x836   :  { %2705 = vmatmul.mubr.msk.f32.vlgmr.msra.gmra.mxu0 %vm947_vm14, %v2092_v55 }
 0x837   :  { %2707 = vmatprep.mubr.msk.f32.mxu0 %vm947_vm14, %v2093_v34 }
 0x83a   :  { %2708 = vmatmul.mubr.msk.f32.gmra.mxu0 %vm947_vm14, %v2094_v1 }
 0x83b   :  { %2710 = vmatprep.mubr.msk.f32.mxu0 %vm947_vm14, %v2095_v9 }
 0x83e   :  { %2711 = vmatmul.mubr.msk.f32.gmra.mxu0 %vm947_vm14, %v2096_v20 }
 0x83f   :  { %2713 = vmatprep.mubr.msk.f32.mxu0 %vm947_vm14, %v2097_v49 }
 0x842   :  { %2714 = vmatmul.mubr.msk.f32.gmra.mxu0 %vm947_vm14, %v2098_v18  ;;  %v2842_v18 = vld [vmem:[%s4345_s0 + $0x90] sm:$0xff] }
 0x8f6   :  { %v2706_v52 = vpop.f32.mrf.mxu0 }
 0x8f7   :  { %v2507_v15 = vmul.f32 -1.442695, %v2706_v52 }
 0x8f8   :  { %v2192_v24 = vpop.f32.mrf.mxu0 }
 0x8f9   :  { %2785 = vpow2.f32 %v2507_v15  ;;  %v2506_v54 = vmul.f32 -1.442695, %v2192_v24  ;;  %v2843_v15 = vld [vmem:[%s4345_s0 + $0x98] sm:$0xff] }
 0x8fa   :  { %v2709_v17 = vpop.f32.mrf.mxu0 }
 0x8fb   :  { %2787 = vpow2.f32 %v2506_v54  ;;  %v2509_v23 = vmul.f32 -1.442695, %v2709_v17 }
 0x8fc   :  { %v2202_v38 = vpop.f32.mrf.mxu0 }
 0x8fd   :  { %2789 = vpow2.f32 %v2509_v23  ;;  %v2508_v22 = vmul.f32 -1.442695, %v2202_v38 }
 0x8fe   :  { %v2712_v58 = vpop.f32.mrf.mxu0 }
 0x8ff   :  { %2791 = vpow2.f32 %v2508_v22  ;;  %v2511_v36 = vmul.f32 -1.442695, %v2712_v58  ;;  %v2844_v22 = vld [vmem:[%s4345_s0 + $0x80] sm:$0xff] }
 0x900   :  { %v2212_v27 = vpop.f32.mrf.mxu0 }
 0x901   :  { %2793 = vpow2.f32 %v2511_v36  ;;  %v2510_v50 = vmul.f32 -1.442695, %v2212_v27  ;;  %v2845_v36 = vld [vmem:[%s4345_s0 + $0x88] sm:$0xff] }
 0x902   :  { %v2715_v60 = vpop.f32.mrf.mxu0 }
 0x903   :  { %2795 = vpow2.f32 %v2510_v50  ;;  %v2513_v31 = vmul.f32 -1.442695, %v2715_v60 }
 0x904   :  { %v2222_v29 = vpop.f32.mrf.mxu0 }
 0x905   :  { %2797 = vpow2.f32 %v2513_v31  ;;  %v2512_v7 = vmul.f32 -1.442695, %v2222_v29  ;;  %v1789_v29 = vadd.f32 %v4162_v28, %v4013_v3 }
 0x906   :  { %v2786_v6 = vpop.eup %2785 }
 0x907   :  { %v2256_v2 = vadd.f32 1.0, %v2786_v6  ;;  %2799 = vpow2.f32 %v2512_v7  ;;  %v1791_v7 = vadd.f32 %v4164_v45, %v4013_v3  ;;  %v2848_v3 = vld [vmem:[%s4345_s0 + $0xa0] sm:$0xff] }
 0x908   :  { %v2788_v35 = vpop.eup %2787 }
 0x909   :  { %2801 = vrcp.f32 %v2256_v2  ;;  %v2255_v32 = vadd.f32 1.0, %v2788_v35  ;;  %v2849_v2 = vld [vmem:[%s4345_s0 + $0xa8] sm:$0xff] }
 0x90a   :  { %v2790_v5 = vpop.eup %2789 }
 0x90b   :  { %2803 = vrcp.f32 %v2255_v32  ;;  %v2258_v56 = vadd.f32 1.0, %v2790_v5 }
 0x90c   :  { %v2792_v8 = vpop.eup %2791 }
 0x90d   :  { %v2257_v39 = vadd.f32 1.0, %v2792_v8  ;;  %2805 = vrcp.f32 %v2258_v56 }
 0x90e   :  { %v2794_v48 = vpop.eup %2793 }
 0x90f   :  { %2807 = vrcp.f32 %v2257_v39  ;;  %v2260_v19 = vadd.f32 1.0, %v2794_v48 }
 0x910   :  { %v2796_v47 = vpop.eup %2795 }
 0x911   :  { %v2259_v10 = vadd.f32 1.0, %v2796_v47  ;;  %2809 = vrcp.f32 %v2260_v19 }
 0x912   :  { %v2798_v46 = vpop.eup %2797 }
 0x913   :  { %2811 = vrcp.f32 %v2259_v10  ;;  %v2262_v59 = vadd.f32 1.0, %v2798_v46 }
 0x914   :  { %v2800_v61 = vpop.eup %2799 }
 0x915   :  { %v2261_v33 = vadd.f32 1.0, %v2800_v61  ;;  %2813 = vrcp.f32 %v2262_v59  ;;  %v1801_v59 = vadd.f32 %v4193_v25, %v4029_v40  ;;  %v1803_v61 = vadd.f32 %v4195_v44, %v4029_v40  ;;  %v2852_v40 = vld [vmem:[%s4345_s0 + $0xc0] sm:$0xff] }
 0x916   :  { %v2802_v62 = vpop.eup %2801 }
 0x917   :  { %2815 = vrcp.f32 %v2261_v33  ;;  %2286 = vperm.xlu1 %2752, %v2802_v62   ;;  %v2853_v62 = vld [vmem:[%s4345_s0 + $0xc8] sm:$0xff] }
 0x918   :  { %v2804_v51 = vpop.eup %2803 }
 0x919   :  { %2281 = vperm.xlu0 %2751, %v2804_v51  }
 0x91a   :  { %v2806_v11 = vpop.eup %2805 }
 0x91c   :  { %v2808_v30 = vpop.eup %2807 }
 0x91d   :  { %2296 = vperm.xlu0 %2751, %v2806_v11   ;;  %2291 = vperm.xlu1 %2752, %v2808_v30  }
 0x91e   :  { %v2810_v13 = vpop.eup %2809 }
 0x920   :  { %v2812_v37 = vpop.eup %2811 }
 0x921   :  { %2306 = vperm.xlu0 %2751, %v2810_v13   ;;  %2301 = vperm.xlu1 %2752, %v2812_v37  }
 0x922   :  { %v2814_v55 = vpop.eup %2813 }
 0x924   :  { %v2816_v34 = vpop.eup %2815 }
 0x925   :  { %2316 = vperm.xlu0 %2751, %v2814_v55   ;;  %2311 = vperm.xlu1 %2752, %v2816_v34  }
 0x992   :  { %v2287_v1 = vpop.permute.xlu1 %2286 }
 0x993   :  { %v2321_v9 = vmul.f32 %v2287_v1, %v4143_v21  ;;  %v2322_v20 = vmul.f32 %v2287_v1, %v4146_v14  ;;  %v1777_v21 = vadd.f32 %v4154_v43, %v3997_v4  ;;  %v1779_v14 = vadd.f32 %v4156_v57, %v3997_v4 }
 0x994   :  { %v2282_v49 = vpop.permute.xlu0 %2281 }
 0x995   :  { %v2337_v52 = vadd.f32 %v2842_v18, %v2321_v9  ;;  %v2338_v24 = vadd.f32 %v2843_v15, %v2322_v20  ;;  %v2319_v54 = vmul.f32 %v2282_v49, %v4137_v0  ;;  %v2320_v17 = vmul.f32 %v2282_v49, %v4140_v16  ;;  %v2854_v18 = vld [vmem:[%s4345_s0 + $0xf0] sm:$0xff]  ;;  %v2855_v15 = vld [vmem:[%s4345_s0 + $0xf8] sm:$0xff] }
 0x997   :  { %v2353_v23 = vmax.f32 %v2337_v52, 0.0  ;;  %v2354_v38 = vmax.f32 %v2338_v24, 0.0  ;;  %v2335_v58 = vadd.f32 %v2844_v22, %v2319_v54  ;;  %v2336_v0 = vadd.f32 %v2845_v36, %v2320_v17  ;;  %v2857_v54 = vld [vmem:[%s4345_s0 + $0xe8] sm:$0xff] }
 0x998   :  { %v2297_v27 = vpop.permute.xlu0 %2296  ;;  %v2292_v16 = vpop.permute.xlu1 %2291 }
 0x999   :  { %2516 = vst [vmem:[%s4354_s9 + $0x90] sm:$0xff] %v2353_v23  ;;  %2517 = vst [vmem:[%s4354_s9 + $0x98] sm:$0xff] %v2354_v38  ;;  %v2351_v4 = vmax.f32 %v2335_v58, 0.0  ;;  %v2352_v43 = vmax.f32 %v2336_v0, 0.0  ;;  %v2325_v57 = vmul.f32 %v2297_v27, %v1777_v21  ;;  %v2326_v50 = vmul.f32 %v2297_v27, %v1779_v14 }
 0x99a   :  { %v2323_v60 = vmul.f32 %v2292_v16, %v4149_v26  ;;  %v2324_v31 = vmul.f32 %v2292_v16, %v4152_v12  ;;  %v2846_v26 = vld [vmem:[%s4345_s0 + $0xb0] sm:$0xff]  ;;  %v2847_v12 = vld [vmem:[%s4345_s0 + $0xb8] sm:$0xff] }
 0x99b   :  { %2514 = vst [vmem:[%s4354_s9 + $0x80] sm:$0xff] %v2351_v4  ;;  %2515 = vst [vmem:[%s4354_s9 + $0x88] sm:$0xff] %v2352_v43  ;;  %v2341_v6 = vadd.f32 %v2846_v26, %v2325_v57  ;;  %v2342_v28 = vadd.f32 %v2847_v12, %v2326_v50 }
 0x99c   :  { %v2339_v45 = vadd.f32 %v2848_v3, %v2323_v60  ;;  %v2340_v35 = vadd.f32 %v2849_v2, %v2324_v31  ;;  %v2307_v32 = vpop.permute.xlu0 %2306  ;;  %v2302_v5 = vpop.permute.xlu1 %2301 }
 0x99d   :  { %v2357_v56 = vmax.f32 %v2341_v6, 0.0  ;;  %v2358_v8 = vmax.f32 %v2342_v28, 0.0  ;;  %v2329_v39 = vmul.f32 %v2307_v32, %v1789_v29  ;;  %v2330_v48 = vmul.f32 %v2307_v32, %v1791_v7 }
 0x99e   :  { %v2355_v19 = vmax.f32 %v2339_v45, 0.0  ;;  %v2356_v47 = vmax.f32 %v2340_v35, 0.0  ;;  %v2327_v10 = vmul.f32 %v2302_v5, %v4158_v41  ;;  %v2328_v46 = vmul.f32 %v2302_v5, %v4160_v53  ;;  %v2850_v41 = vld [vmem:[%s4345_s0 + $0xd0] sm:$0xff]  ;;  %v2851_v53 = vld [vmem:[%s4345_s0 + $0xd8] sm:$0xff] }
 0x99f   :  { %2520 = vst [vmem:[%s4354_s9 + $0xb0] sm:$0xff] %v2357_v56  ;;  %2521 = vst [vmem:[%s4354_s9 + $0xb8] sm:$0xff] %v2358_v8  ;;  %v2345_v33 = vadd.f32 %v2850_v41, %v2329_v39  ;;  %v2346_v25 = vadd.f32 %v2851_v53, %v2330_v48 }
 0x9a0   :  { %2518 = vst [vmem:[%s4354_s9 + $0xa0] sm:$0xff] %v2355_v19  ;;  %2519 = vst [vmem:[%s4354_s9 + $0xa8] sm:$0xff] %v2356_v47  ;;  %v2343_v44 = vadd.f32 %v2852_v40, %v2327_v10  ;;  %v2344_v51 = vadd.f32 %v2853_v62, %v2328_v46  ;;  %v2317_v11 = vpop.permute.xlu0 %2316  ;;  %v2312_v30 = vpop.permute.xlu1 %2311 }
 0x9a1   :  { %v2361_v13 = vmax.f32 %v2345_v33, 0.0  ;;  %v2362_v37 = vmax.f32 %v2346_v25, 0.0  ;;  %v2333_v55 = vmul.f32 %v2317_v11, %v1801_v59  ;;  %v2334_v34 = vmul.f32 %v2317_v11, %v1803_v61 }
 0x9a2   :  { %v2359_v1 = vmax.f32 %v2343_v44, 0.0  ;;  %v2360_v9 = vmax.f32 %v2344_v51, 0.0  ;;  %v2331_v20 = vmul.f32 %v2312_v30, %v4166_v42  ;;  %v2332_v49 = vmul.f32 %v2312_v30, %v4168_v63  ;;  %v2856_v63 = vld [vmem:[%s4345_s0 + $0xe0] sm:$0xff] }
 0x9a3   :  { %2524 = vst [vmem:[%s4354_s9 + $0xd0] sm:$0xff] %v2361_v13  ;;  %2525 = vst [vmem:[%s4354_s9 + $0xd8] sm:$0xff] %v2362_v37  ;;  %v2349_v52 = vadd.f32 %v2854_v18, %v2333_v55  ;;  %v2350_v42 = vadd.f32 %v2855_v15, %v2334_v34 }
 0x9a4   :  { %2522 = vst [vmem:[%s4354_s9 + $0xc0] sm:$0xff] %v2359_v1  ;;  %2523 = vst [vmem:[%s4354_s9 + $0xc8] sm:$0xff] %v2360_v9  ;;  %v2347_v24 = vadd.f32 %v2856_v63, %v2331_v20  ;;  %v2348_v17 = vadd.f32 %v2857_v54, %v2332_v49 }
 0x9a5   :  { %v2365_v21 = vmax.f32 %v2349_v52, 0.0  ;;  %v2366_v14 = vmax.f32 %v2350_v42, 0.0 }
 0x9a6   :  { %v2363_v23 = vmax.f32 %v2347_v24, 0.0  ;;  %v2364_v38 = vmax.f32 %v2348_v17, 0.0 }
 0x9a7   :  { %2528 = vst [vmem:[%s4354_s9 + $0xf0] sm:$0xff] %v2365_v21  ;;  %2529 = vst [vmem:[%s4354_s9 + $0xf8] sm:$0xff] %v2366_v14 }
 0x9a8   :  { %2526 = vst [vmem:[%s4354_s9 + $0xe0] sm:$0xff] %v2363_v23  ;;  %2527 = vst [vmem:[%s4354_s9 + $0xe8] sm:$0xff] %v2364_v38 }

</bundles_post_ra>
